<compile_context>
chip_gen: v7x
topology: tpu7x:2x2x1
jax: 0.10.0
libtpu: 0.0.40
codegen_flags: <defaults>
</compile_context>

<pallas_src>
import functools

import numpy as np
import jax
import jax.numpy as jnp
from jax import lax
from jax.experimental import pallas as pl
from jax.experimental.pallas import tpu as pltpu


def _nms_kernel(bbs_ref, conf_ref, out_ref, over_scr, *,
                num_boxes, block_classes, nms_threshold, pre_threshold,
                lo, hi, row_block):
    """One (batch, class-group) tile of greedy per-class NMS."""
    N = num_boxes
    Cg = block_classes
    Cgp = ((Cg + 7) // 8) * 8            # pad class rows to a sublane multiple
    pad = Cgp - Cg
    f32 = jnp.float32

    # ---- box geometry, row (lane) form: boxes live on lanes.
    box_r = bbs_ref[0].astype(f32)                   # (4, N): cx, cy, w, h rows
    cx_r, cy_r = box_r[0:1, :], box_r[1:2, :]
    w_r, h_r = box_r[2:3, :], box_r[3:4, :]
    x1_r, x2_r = cx_r - 0.5 * w_r, cx_r + 0.5 * w_r
    y1_r, y2_r = cy_r - 0.5 * h_r, cy_r + 0.5 * h_r
    area_r = w_r * h_r

    geom_r = jnp.concatenate(
        [x1_r, x2_r, y1_r, y2_r, area_r, jnp.zeros((3, N), f32)], axis=0)  # (8, N)
    geom_c = geom_r.T                                                      # (N, 8)

    # ---- over_scr[k, i] = 1 iff IoU(box_k, box_i) > nms_threshold.
    # Built in row blocks so live (row_block, N) f32 transients stay small
    # (mandatory for large N on v7x's 64 MiB VMEM). f32 compare done here once;
    # the hot loop only consumes exact 0/1 bf16 data.
    for r0 in range(0, N, row_block):
        gc = geom_c[r0:r0 + row_block, :]            # (row_block, 8)
        x1_c, x2_c = gc[:, 0:1], gc[:, 1:2]
        y1_c, y2_c = gc[:, 2:3], gc[:, 3:4]
        area_c = gc[:, 4:5]
        iw = jnp.maximum(jnp.minimum(x2_c, x2_r) - jnp.maximum(x1_c, x1_r), 0.0)
        ih = jnp.maximum(jnp.minimum(y2_c, y2_r) - jnp.maximum(y1_c, y1_r), 0.0)
        inter = iw * ih
        union = area_c + area_r - inter
        iou = jnp.where(union > 0.0, inter / jnp.maximum(union, 1e-30), 0.0)
        over_scr[r0:r0 + row_block, :] = jnp.where(
            iou > nms_threshold, 1.0, 0.0).astype(jnp.bfloat16)

    # ---- per-class confidences (f32 working copy), padded class rows.
    conf0 = conf_ref[0].astype(f32)                  # (Cg, N)
    if pad:
        conf0 = jnp.concatenate([conf0, jnp.zeros((pad, N), f32)], axis=0)
    # TODO(synk): exact pre-threshold tie (< vs <=) of nmsfilt_cpu is unverified;
    # keeping boxes with conf > pre_threshold, applied only when pre_threshold >= 0.
    if pre_threshold >= 0.0:
        conf_work = jnp.where(conf0 > pre_threshold, conf0, 0.0)
    else:
        conf_work = conf0

    neg_inf = jnp.float32(-jnp.inf)
    lane = lax.broadcasted_iota(jnp.int32, (Cgp, N), 1)

    # Candidate pool: -inf marks "not a candidate" (dead, already pivoted, or
    # already suppressed).  Boxes with conf == 0 never pivot (reference skips them).
    cand0 = jnp.where(conf_work != 0.0, conf_work, neg_inf)
    not_done0 = jnp.max(cand0) > neg_inf

    def cond(state):
        return state[0]

    def body(state):
        _, cand, out = state
        rowmax = jnp.max(cand, axis=-1, keepdims=True)            # (Cgp, 1)
        has = rowmax > neg_inf
        # first (lowest-index) argmax per class -> one-hot pivot row (stable order)
        pidx = jnp.min(jnp.where((cand == rowmax) & has, lane, N),
                       axis=-1, keepdims=True)                    # (Cgp, 1)
        pivot = lane == pidx                                      # (Cgp, N) bool
        hit = jnp.dot(pivot.astype(jnp.bfloat16), over_scr[...],
                      preferred_element_type=jnp.float32)         # exact 0/1 rows
        hitm = hit > 0.5
        is_cand = cand > neg_inf
        # zero lower-ranked, still-live boxes that overlap the pivot
        out = jnp.where(hitm & (~pivot) & is_cand, 0.0, out)
        # pivot processed + suppressed boxes removed from the candidate pool
        cand = jnp.where(pivot | hitm, neg_inf, cand)
        return jnp.max(cand) > neg_inf, cand, out

    _, _, nms_out = lax.while_loop(cond, body, (not_done0, cand0, conf_work))

    # ---- blend filtered vs. passthrough classes; lane-dense store, caller dtype.
    g = pl.program_id(1)
    c_global = g * Cg + lax.broadcasted_iota(jnp.int32, (Cgp, 1), 0)
    in_range = (c_global >= lo) & (c_global < hi)
    final = jnp.where(in_range, nms_out, conf0)
    out_ref[0, :, :] = final[:Cg, :].astype(out_ref.dtype)


def nms_filter(bbs, conf, nms_threshold=0.45, classes=-1, pre_threshold=-1.0,
               first_class=0, *, class_block=None):
    """Pallas TPU implementation of NMSFilter.forward."""
    assert first_class >= 0
    B, N0, four = bbs.shape
    assert four == 4
    Bc, C, Nc = conf.shape
    assert (Bc, Nc) == (B, N0)

    if classes < 0:
        lo, hi = 0, C
    else:
        lo = min(first_class, C)
        hi = min(first_class + classes, C)

    # Pad boxes to a lane multiple of 128 (zero boxes never pivot nor overlap).
    N = ((N0 + 127) // 128) * 128
    if N != N0:
        bbs = jnp.pad(bbs, ((0, 0), (0, N - N0), (0, 0)))
        conf = jnp.pad(conf, ((0, 0), (0, 0), (0, N - N0)))

    bbs_rows = jnp.transpose(bbs, (0, 2, 1))          # (B, 4, N): boxes on lanes

    # Class grouping: default is ONE group per image so the (N, N) overlap matrix
    # is built exactly once per batch element.  An explicit class_block (multiple
    # of 8 dividing C) creates a second parallel grid axis (v7x megacore).
    if class_block is None or class_block <= 0 or class_block >= C:
        class_block = C
    if class_block != C and (C % class_block != 0 or class_block % 8 != 0):
        class_block = C
    Cg = class_block
    G = C // Cg

    # Row-block size for the tiled IoU build (caps live f32 transients).
    if N <= 512:
        row_block = N
    elif N <= 2048:
        row_block = 256 if N % 256 == 0 else 128
    else:
        row_block = 128

    kernel = functools.partial(
        _nms_kernel,
        num_boxes=N, block_classes=Cg,
        nms_threshold=float(nms_threshold), pre_threshold=float(pre_threshold),
        lo=lo, hi=hi, row_block=row_block)

    cgp = ((Cg + 7) // 8) * 8
    esize = jnp.dtype(conf.dtype).itemsize
    # bf16 overlap scratch + blocked f32 IoU transients + loop state +
    # double-buffered conf/out blocks + geometry, with headroom.
    budget = (N * N * 2 + 6 * row_block * N * 4 + 6 * cgp * N * 4
              + 4 * cgp * N * esize + 6 * 8 * N * 4 + (4 << 20))
    try:
        cap = int(getattr(pltpu.get_tpu_info(), "vmem_capacity_bytes", 64 << 20))
    except Exception:
        cap = 64 << 20
    vmem_limit = int(min(max(budget, 16 << 20), int(cap * 0.85)))

    out = pl.pallas_call(
        kernel,
        out_shape=jax.ShapeDtypeStruct((B, C, N), conf.dtype),
        grid_spec=pltpu.PrefetchScalarGridSpec(
            num_scalar_prefetch=0,
            grid=(B, G),
            in_specs=[
                pl.BlockSpec((1, 4, N), lambda b, g: (b, 0, 0)),    # bbs^T rows
                pl.BlockSpec((1, Cg, N), lambda b, g: (b, g, 0)),   # conf rows
            ],
            out_specs=pl.BlockSpec((1, Cg, N), lambda b, g: (b, g, 0)),
            scratch_shapes=[pltpu.VMEM((N, N), jnp.bfloat16)],      # IoU > thr (0/1)
        ),
        compiler_params=pltpu.CompilerParams(
            dimension_semantics=("parallel", "parallel"),
            vmem_limit_bytes=vmem_limit),
    )(bbs_rows, conf)

    if N != N0:
        out = out[:, :, :N0]
    return out


def _nms_reference(bbs, conf, nms_threshold, classes, pre_threshold, first_class):
    """Pure NumPy reference of the same greedy NMS semantics."""
    bbs = np.asarray(bbs, dtype=np.float32)
    conf = np.array(conf, dtype=np.float32, copy=True)
    B, N, _ = bbs.shape
    C = conf.shape[1]
    cls_range = range(C) if classes < 0 else range(first_class,
                                                   min(first_class + classes, C))
    for b in range(B):
        cx, cy, w, h = bbs[b, :, 0], bbs[b, :, 1], bbs[b, :, 2], bbs[b, :, 3]
        x1, x2 = cx - 0.5 * w, cx + 0.5 * w
        y1, y2 = cy - 0.5 * h, cy + 0.5 * h
        area = w * h
        iw = np.maximum(np.minimum(x2[:, None], x2[None, :]) -
                        np.maximum(x1[:, None], x1[None, :]), 0.0)
        ih = np.maximum(np.minimum(y2[:, None], y2[None, :]) -
                        np.maximum(y1[:, None], y1[None, :]), 0.0)
        inter = iw * ih
        union = area[:, None] + area[None, :] - inter
        iou = np.where(union > 0.0, inter / np.maximum(union, 1e-30), 0.0)
        for c in cls_range:
            v = conf[b, c].copy()
            if pre_threshold >= 0.0:
                v = np.where(v > pre_threshold, v, 0.0).astype(np.float32)
            order = np.argsort(-v, kind="stable")
            for oi in range(N):
                i = order[oi]
                if v[i] == 0.0:
                    continue
                for oj in range(oi + 1, N):
                    j = order[oj]
                    if iou[i, j] > nms_threshold:
                        v[j] = 0.0
            conf[b, c] = v
    return conf


if __name__ == "__main__":
    key = jax.random.PRNGKey(0)

    def make_inputs(k, B, C, N):
        k1, k2, k3 = jax.random.split(k, 3)
        cxy = jax.random.uniform(k1, (B, N, 2), dtype=jnp.float32)
        wh = jax.random.uniform(k2, (B, N, 2), dtype=jnp.float32,
                                minval=0.05, maxval=0.4)
        bbs = jnp.concatenate([cxy, wh], axis=-1)           # (B, N, 4) cx,cy,w,h
        conf = jax.random.uniform(k3, (B, C, N), dtype=jnp.float32)
        return bbs, conf

    k1, k2, k3 = jax.random.split(key, 3)

    # Test 1: NMSFilter defaults (all classes), lane-aligned N.
    bbs, conf = make_inputs(k1, 2, 4, 128)
    out = jax.block_until_ready(nms_filter(bbs, conf))
    ref = _nms_reference(np.asarray(bbs), np.asarray(conf), 0.45, -1, -1.0, 0)
    assert out.shape == conf.shape and out.dtype == conf.dtype
    np.testing.assert_allclose(np.asarray(out), ref, atol=1e-5)

    # Test 2: pre-threshold, restricted class range, non-aligned N (exercises padding).
    bbs2, conf2 = make_inputs(k2, 1, 6, 96)
    out2 = jax.block_until_ready(
        nms_filter(bbs2, conf2, nms_threshold=0.5, classes=3,
                   pre_threshold=0.3, first_class=2))
    ref2 = _nms_reference(np.asarray(bbs2), np.asarray(conf2), 0.5, 3, 0.3, 2)
    assert out2.shape == conf2.shape and out2.dtype == conf2.dtype
    np.testing.assert_allclose(np.asarray(out2), ref2, atol=1e-5)

    # Test 3: explicit class grouping (G > 1, megacore-style split) with a class
    # range spanning both groups.
    bbs3, conf3 = make_inputs(k3, 1, 16, 128)
    out3 = jax.block_until_ready(
        nms_filter(bbs3, conf3, nms_threshold=0.45, classes=5,
                   first_class=6, class_block=8))
    ref3 = _nms_reference(np.asarray(bbs3), np.asarray(conf3), 0.45, 5, -1.0, 6)
    assert out3.shape == conf3.shape and out3.dtype == conf3.dtype
    np.testing.assert_allclose(np.asarray(out3), ref3, atol=1e-5)

    print("KERNEL_OK")
</pallas_src>

<mosaic_0001>
module attributes {stable_mosaic.version = 11 : i64} {
  func.func @_nms_kernel(%arg0: i32, %arg1: i32, %arg2: memref<1x4x128xf32, #tpu.memory_space<vmem>>, %arg3: memref<1x4x128xf32, #tpu.memory_space<vmem>>, %arg4: memref<1x4x128xf32, #tpu.memory_space<vmem>>, %arg5: memref<128x128xbf16, #tpu.memory_space<vmem>>) attributes {dimension_semantics = [#tpu.dimension_semantics<parallel>, #tpu.dimension_semantics<parallel>], iteration_bounds = array<i64: 2, 1>, scalar_prefetch = 0 : i64, scratch_operands = 1 : i64, tpu.core_type = #tpu.core_type<tc>, window_params = [{transform_indices = @transform_0, window_bounds = array<i64: 1, 4, 128>}, {transform_indices = @transform_1, window_bounds = array<i64: 1, 4, 128>}, {transform_indices = @transform_2, window_bounds = array<i64: 1, 4, 128>}]} {
    %c0 = arith.constant 0 : index
    %c0_0 = arith.constant 0 : index
    %c0_1 = arith.constant 0 : index
    %0 = vector.load %arg2[%c0, %c0_0, %c0_1] : memref<1x4x128xf32, #tpu.memory_space<vmem>>, vector<1x4x128xf32>
    %1 = vector.shape_cast %0 : vector<1x4x128xf32> to vector<4x128xf32>
    %2 = vector.extract_strided_slice %1 {offsets = [0, 0], sizes = [1, 128], strides = [1, 1]} : vector<4x128xf32> to vector<1x128xf32>
    %3 = vector.extract_strided_slice %1 {offsets = [1, 0], sizes = [1, 128], strides = [1, 1]} : vector<4x128xf32> to vector<1x128xf32>
    %4 = vector.extract_strided_slice %1 {offsets = [2, 0], sizes = [1, 128], strides = [1, 1]} : vector<4x128xf32> to vector<1x128xf32>
    %5 = vector.extract_strided_slice %1 {offsets = [3, 0], sizes = [1, 128], strides = [1, 1]} : vector<4x128xf32> to vector<1x128xf32>
    %cst = arith.constant 5.000000e-01 : f32
    %6 = vector.broadcast %cst : f32 to vector<1x128xf32>
    %7 = arith.mulf %6, %4 : vector<1x128xf32>
    %8 = arith.subf %2, %7 : vector<1x128xf32>
    %cst_2 = arith.constant 5.000000e-01 : f32
    %9 = vector.broadcast %cst_2 : f32 to vector<1x128xf32>
    %10 = arith.mulf %9, %4 : vector<1x128xf32>
    %11 = arith.addf %2, %10 : vector<1x128xf32>
    %cst_3 = arith.constant 5.000000e-01 : f32
    %12 = vector.broadcast %cst_3 : f32 to vector<1x128xf32>
    %13 = arith.mulf %12, %5 : vector<1x128xf32>
    %14 = arith.subf %3, %13 : vector<1x128xf32>
    %cst_4 = arith.constant 5.000000e-01 : f32
    %15 = vector.broadcast %cst_4 : f32 to vector<1x128xf32>
    %16 = arith.mulf %15, %5 : vector<1x128xf32>
    %17 = arith.addf %3, %16 : vector<1x128xf32>
    %18 = arith.mulf %4, %5 : vector<1x128xf32>
    %cst_5 = arith.constant 0.000000e+00 : f32
    %19 = vector.broadcast %cst_5 : f32 to vector<3x128xf32>
    %20 = tpu.concatenate %8, %11, %14, %17, %18, %19 in 0 : vector<1x128xf32>, vector<1x128xf32>, vector<1x128xf32>, vector<1x128xf32>, vector<1x128xf32>, vector<3x128xf32> -> vector<8x128xf32>
    %21 = tpu.transpose %20, [1, 0] : vector<8x128xf32> -> vector<128x8xf32>
    %22 = vector.extract_strided_slice %21 {offsets = [0, 0], sizes = [128, 1], strides = [1, 1]} : vector<128x8xf32> to vector<128x1xf32>
    %23 = vector.extract_strided_slice %21 {offsets = [0, 1], sizes = [128, 1], strides = [1, 1]} : vector<128x8xf32> to vector<128x1xf32>
    %24 = vector.extract_strided_slice %21 {offsets = [0, 2], sizes = [128, 1], strides = [1, 1]} : vector<128x8xf32> to vector<128x1xf32>
    %25 = vector.extract_strided_slice %21 {offsets = [0, 3], sizes = [128, 1], strides = [1, 1]} : vector<128x8xf32> to vector<128x1xf32>
    %26 = vector.extract_strided_slice %21 {offsets = [0, 4], sizes = [128, 1], strides = [1, 1]} : vector<128x8xf32> to vector<128x1xf32>
    %27 = vector.broadcast %23 : vector<128x1xf32> to vector<128x128xf32>
    %28 = vector.broadcast %11 : vector<1x128xf32> to vector<128x128xf32>
    %29 = arith.minimumf %27, %28 : vector<128x128xf32>
    %30 = vector.broadcast %22 : vector<128x1xf32> to vector<128x128xf32>
    %31 = vector.broadcast %8 : vector<1x128xf32> to vector<128x128xf32>
    %32 = arith.maximumf %30, %31 : vector<128x128xf32>
    %33 = arith.subf %29, %32 : vector<128x128xf32>
    %cst_6 = arith.constant 0.000000e+00 : f32
    %34 = vector.broadcast %cst_6 : f32 to vector<128x128xf32>
    %35 = arith.maximumf %33, %34 : vector<128x128xf32>
    %36 = vector.broadcast %25 : vector<128x1xf32> to vector<128x128xf32>
    %37 = vector.broadcast %17 : vector<1x128xf32> to vector<128x128xf32>
    %38 = arith.minimumf %36, %37 : vector<128x128xf32>
    %39 = vector.broadcast %24 : vector<128x1xf32> to vector<128x128xf32>
    %40 = vector.broadcast %14 : vector<1x128xf32> to vector<128x128xf32>
    %41 = arith.maximumf %39, %40 : vector<128x128xf32>
    %42 = arith.subf %38, %41 : vector<128x128xf32>
    %cst_7 = arith.constant 0.000000e+00 : f32
    %43 = vector.broadcast %cst_7 : f32 to vector<128x128xf32>
    %44 = arith.maximumf %42, %43 : vector<128x128xf32>
    %45 = arith.mulf %35, %44 : vector<128x128xf32>
    %46 = vector.broadcast %26 : vector<128x1xf32> to vector<128x128xf32>
    %47 = vector.broadcast %18 : vector<1x128xf32> to vector<128x128xf32>
    %48 = arith.addf %46, %47 : vector<128x128xf32>
    %49 = arith.subf %48, %45 : vector<128x128xf32>
    %cst_8 = arith.constant 0.000000e+00 : f32
    %50 = vector.broadcast %cst_8 : f32 to vector<128x128xf32>
    %51 = arith.cmpf ogt, %49, %50 : vector<128x128xf32>
    %cst_9 = arith.constant 1.000000e-30 : f32
    %52 = vector.broadcast %cst_9 : f32 to vector<128x128xf32>
    %53 = arith.maximumf %49, %52 : vector<128x128xf32>
    %54 = arith.divf %45, %53 : vector<128x128xf32>
    %cst_10 = arith.constant 0.000000e+00 : f32
    %55 = vector.broadcast %cst_10 : f32 to vector<128x128xf32>
    %56 = arith.select %51, %54, %55 : vector<128x128xi1>, vector<128x128xf32>
    %cst_11 = arith.constant 4.500000e-01 : f32
    %57 = vector.broadcast %cst_11 : f32 to vector<128x128xf32>
    %58 = arith.cmpf ogt, %56, %57 : vector<128x128xf32>
    %cst_12 = arith.constant 1.000000e+00 : f32
    %cst_13 = arith.constant 0.000000e+00 : f32
    %59 = vector.broadcast %cst_12 : f32 to vector<128x128xf32>
    %60 = vector.broadcast %cst_13 : f32 to vector<128x128xf32>
    %61 = arith.select %58, %59, %60 : vector<128x128xi1>, vector<128x128xf32>
    %62 = arith.truncf %61 : vector<128x128xf32> to vector<128x128xbf16>
    %c0_14 = arith.constant 0 : index
    %c0_15 = arith.constant 0 : index
    %63 = vector.load %arg5[%c0_14, %c0_15] : memref<128x128xbf16, #tpu.memory_space<vmem>>, vector<128x128xbf16>
    tpu.vector_store %arg5[%c0_14, %c0_15], %62 {strides = array<i32>} : memref<128x128xbf16, #tpu.memory_space<vmem>>, vector<128x128xbf16>,
    %c0_16 = arith.constant 0 : index
    %c0_17 = arith.constant 0 : index
    %c0_18 = arith.constant 0 : index
    %64 = vector.load %arg3[%c0_16, %c0_17, %c0_18] : memref<1x4x128xf32, #tpu.memory_space<vmem>>, vector<1x4x128xf32>
    %65 = vector.shape_cast %64 : vector<1x4x128xf32> to vector<4x128xf32>
    %cst_19 = arith.constant 0.000000e+00 : f32
    %66 = vector.broadcast %cst_19 : f32 to vector<4x128xf32>
    %67 = tpu.concatenate %65, %66 in 0 : vector<4x128xf32>, vector<4x128xf32> -> vector<8x128xf32>
    %68 = tpu.iota {dimensions = array<i32: 1>} : vector<8x128xi32>
    %cst_20 = arith.constant 0.000000e+00 : f32
    %69 = vector.broadcast %cst_20 : f32 to vector<8x128xf32>
    %70 = arith.cmpf one, %67, %69 : vector<8x128xf32>
    %cst_21 = arith.constant 0xFF800000 : f32
    %71 = vector.broadcast %cst_21 : f32 to vector<8x128xf32>
    %72 = arith.select %70, %67, %71 : vector<8x128xi1>, vector<8x128xf32>
    %73 = vector.shape_cast %72 : vector<8x128xf32> to vector<1x8x128xf32>
    %cst_22 = arith.constant dense<0xFF800000> : vector<1xf32>
    %74 = vector.multi_reduction <maximumf>, %73, %cst_22 [1, 2] : vector<1x8x128xf32> to vector<1xf32>
    %75 = vector.shape_cast %74 : vector<1xf32> to vector<1x1x1xf32>
    %76 = vector.extract %75[0, 0, 0] : f32 from vector<1x1x1xf32>
    %cst_23 = arith.constant 0xFF800000 : f32
    %77 = arith.cmpf ogt, %76, %cst_23 : f32
    %cst_24 = arith.constant 0xFF800000 : f32
    %78:3 = scf.while (%arg6 = %77, %arg7 = %72, %arg8 = %67) : (i1, vector<8x128xf32>, vector<8x128xf32>) -> (i1, vector<8x128xf32>, vector<8x128xf32>) {
      scf.condition(%arg6) %arg6, %arg7, %arg8 : i1, vector<8x128xf32>, vector<8x128xf32>
    } do {
    ^bb0(%arg6: i1, %arg7: vector<8x128xf32>, %arg8: vector<8x128xf32>):
      %cst_29 = arith.constant dense<0xFF800000> : vector<8xf32>
      %95 = vector.multi_reduction <maximumf>, %arg7, %cst_29 [1] : vector<8x128xf32> to vector<8xf32>
      %96 = vector.shape_cast %95 : vector<8xf32> to vector<8x1xf32>
      %97 = vector.broadcast %cst_24 : f32 to vector<8x1xf32>
      %98 = arith.cmpf ogt, %96, %97 : vector<8x1xf32>
      %99 = vector.broadcast %96 : vector<8x1xf32> to vector<8x128xf32>
      %100 = arith.cmpf oeq, %arg7, %99 : vector<8x128xf32>
      %101 = vector.broadcast %98 : vector<8x1xi1> to vector<8x128xi1>
      %102 = arith.andi %100, %101 : vector<8x128xi1>
      %c128_i32 = arith.constant 128 : i32
      %103 = vector.broadcast %c128_i32 : i32 to vector<8x128xi32>
      %104 = arith.select %102, %68, %103 : vector<8x128xi1>, vector<8x128xi32>
      %cst_30 = arith.constant dense<2147483647> : vector<8xi32>
      %105 = vector.multi_reduction <minsi>, %104, %cst_30 [1] : vector<8x128xi32> to vector<8xi32>
      %106 = vector.shape_cast %105 : vector<8xi32> to vector<8x1xi32>
      %107 = vector.broadcast %106 : vector<8x1xi32> to vector<8x128xi32>
      %108 = arith.cmpi eq, %68, %107 : vector<8x128xi32>
      %109 = arith.extui %108 : vector<8x128xi1> to vector<8x128xi32>
      %110 = arith.sitofp %109 : vector<8x128xi32> to vector<8x128xf32>
      %111 = arith.truncf %110 : vector<8x128xf32> to vector<8x128xbf16>
      %c0_31 = arith.constant 0 : index
      %c0_32 = arith.constant 0 : index
      %112 = vector.load %arg5[%c0_31, %c0_32] : memref<128x128xbf16, #tpu.memory_space<vmem>>, vector<128x128xbf16>
      %cst_33 = arith.constant dense<0.000000e+00> : vector<8x128xf32>
      %113 = tpu.matmul %111, %112, %cst_33 {dimension_numbers = #tpu.dot_dimension_numbers<[1], [0], [0], [1], [0, 0, 1, 1], [], []>} : vector<8x128xbf16>, vector<128x128xbf16>, vector<8x128xf32> -> vector<8x128xf32>
      %cst_34 = arith.constant 5.000000e-01 : f32
      %114 = vector.broadcast %cst_34 : f32 to vector<8x128xf32>
      %115 = arith.cmpf ogt, %113, %114 : vector<8x128xf32>
      %116 = vector.broadcast %cst_24 : f32 to vector<8x128xf32>
      %117 = arith.cmpf ogt, %arg7, %116 : vector<8x128xf32>
      %cst_35 = arith.constant dense<true> : vector<8x128xi1>
      %118 = arith.xori %108, %cst_35 : vector<8x128xi1>
      %119 = arith.andi %115, %118 : vector<8x128xi1>
      %120 = arith.andi %119, %117 : vector<8x128xi1>
      %cst_36 = arith.constant 0.000000e+00 : f32
      %121 = vector.broadcast %cst_36 : f32 to vector<8x128xf32>
      %122 = arith.select %120, %121, %arg8 : vector<8x128xi1>, vector<8x128xf32>
      %123 = arith.ori %108, %115 : vector<8x128xi1>
      %124 = vector.broadcast %cst_24 : f32 to vector<8x128xf32>
      %125 = arith.select %123, %124, %arg7 : vector<8x128xi1>, vector<8x128xf32>
      %126 = vector.shape_cast %125 : vector<8x128xf32> to vector<1x8x128xf32>
      %cst_37 = arith.constant dense<0xFF800000> : vector<1xf32>
      %127 = vector.multi_reduction <maximumf>, %126, %cst_37 [1, 2] : vector<1x8x128xf32> to vector<1xf32>
      %128 = vector.shape_cast %127 : vector<1xf32> to vector<1x1x1xf32>
      %129 = vector.extract %128[0, 0, 0] : f32 from vector<1x1x1xf32>
      %130 = arith.cmpf ogt, %129, %cst_24 : f32
      scf.yield %130, %125, %122 : i1, vector<8x128xf32>, vector<8x128xf32>
    }
    %c4_i32 = arith.constant 4 : i32
    %79 = arith.muli %arg1, %c4_i32 : i32
    %80 = tpu.iota {dimensions = array<i32: 0>} : vector<8x1xi32>
    %81 = vector.broadcast %79 : i32 to vector<8x1xi32>
    %82 = arith.addi %81, %80 : vector<8x1xi32>
    %c0_i32 = arith.constant 0 : i32
    %83 = vector.broadcast %c0_i32 : i32 to vector<8x1xi32>
    %84 = arith.cmpi sge, %82, %83 : vector<8x1xi32>
    %c4_i32_25 = arith.constant 4 : i32
    %85 = vector.broadcast %c4_i32_25 : i32 to vector<8x1xi32>
    %86 = arith.cmpi slt, %82, %85 : vector<8x1xi32>
    %87 = arith.andi %84, %86 : vector<8x1xi1>
    %88 = vector.shape_cast %87 : vector<8x1xi1> to vector<8x1xi1>
    %89 = vector.broadcast %88 : vector<8x1xi1> to vector<8x128xi1>
    %90 = arith.select %89, %78#2, %67 : vector<8x128xi1>, vector<8x128xf32>
    %91 = vector.extract_strided_slice %90 {offsets = [0, 0], sizes = [4, 128], strides = [1, 1]} : vector<8x128xf32> to vector<4x128xf32>
    %c0_26 = arith.constant 0 : index
    %c0_27 = arith.constant 0 : index
    %c0_28 = arith.constant 0 : index
    %92 = vector.load %arg4[%c0_26, %c0_27, %c0_28] : memref<1x4x128xf32, #tpu.memory_space<vmem>>, vector<1x4x128xf32>
    %93 = vector.shape_cast %92 : vector<1x4x128xf32> to vector<4x128xf32>
    %94 = vector.shape_cast %91 : vector<4x128xf32> to vector<1x4x128xf32>
    tpu.vector_store %arg4[%c0_26, %c0_27, %c0_28], %94 {strides = array<i32>} : memref<1x4x128xf32, #tpu.memory_space<vmem>>, vector<1x4x128xf32>,
    return
  }
  func.func @transform_0(%arg0: i32, %arg1: i32) -> (i32, i32, i32) {
    %c0_i32 = arith.constant 0 : i32
    %c0_i32_0 = arith.constant 0 : i32
    %c0_i32_1 = arith.constant 0 : i32
    return %arg0, %c0_i32, %c0_i32_0 : i32, i32, i32
  }
  func.func @transform_1(%arg0: i32, %arg1: i32) -> (i32, i32, i32) {
    %c0_i32 = arith.constant 0 : i32
    %c0_i32_0 = arith.constant 0 : i32
    return %arg0, %arg1, %c0_i32 : i32, i32, i32
  }
  func.func @transform_2(%arg0: i32, %arg1: i32) -> (i32, i32, i32) {
    %c0_i32 = arith.constant 0 : i32
    %c0_i32_0 = arith.constant 0 : i32
    return %arg0, %arg1, %c0_i32 : i32, i32, i32
  }
}

</mosaic_0001>

<bundles_post_ra>
// kernel: tpu_custom_call.1
= control target key start
LH: loop header
LB: loop body
LE: loop exit
PB: predicated region body
PF: predicated region fallthrough
CT: control target
= control target key end

     0   :  { %7 = vsyncpa [#allocation4], 0  ;;  %s2408_s0 = inlined_call_operand.hbm [shape: f32[2,4,128], index: 0, kind: input, shape index: {}]   ;;  %s2409_s1 = inlined_call_operand.hbm [shape: f32[2,4,128], index: 1, kind: input, shape index: {}]   ;;  %s2410_s2 = inlined_call_operand.hbm [shape: f32[2,4,128], index: 2, kind: output, shape index: {}]  }
   0x1   :  { %9 = vsyncpa [#allocation4 + $0x1], 0 }
   0x2   :  { %10 = vsyncpa [#allocation7], 0 }
   0x3   :  { %12 = vsyncpa [#allocation7 + $0x1], 0 }
   0x4   :  { %13 = vsyncpa [#allocation5], 0 }
   0x5   :  { %15 = vsyncpa [#allocation5 + $0x1], 0  ;;  %s1623_s9 = smov 0   ;;  %s1625_s10 = smov 0  }
   0x6   :  { %s1627_s11 = smov 0   ;;  %s1629_s12 = smov 0  }
   0x7   :  { %s1631_s13 = smov 0   ;;  %s1633_s14 = smov 0  }
   0x8 LB: > { %s1192_s15 = sadd.s32 4294967295, %s1581_s14   ;;  %s1193_s16 = sadd.s32 4294967294, %s1581_s14   ;;  %s1581_s14 = sphi %s1633_s14, %s21_s14   ;;  %s1577_s13 = sphi %s1631_s13, %s2438_s13   ;;  %s1573_s12 = sphi %s1629_s12, %s2437_s12   ;;  %s1569_s11 = sphi %s1627_s11, %s2436_s11   ;;  %s1565_s10 = sphi %s1625_s10, %s2435_s10   ;;  %s1561_s9 = sphi %s1623_s9, %s2434_s9  }
   0x9   : > { %s33_s17 = sadd.s32 1, %s1577_s13  ;;  %s40_s18 = sadd.s32 1, %s1569_s11 }
   0xa   : > { %p35_p0 = scmp.ge.s32.totalorder %s33_s17, 2  ;;  %p47_p1 = scmp.ne.s32.totalorder %s1569_s11, %s1565_s10 }
   0xb   : > { %p48_p2 = scmp.eq.s32.totalorder %s1581_s14, 0  ;;  %p53_p3 = scmp.ne.s32.totalorder %s1565_s10, %s1561_s9 }
   0xc   : > { %s2440_s17 = smov (%p35_p0, %s33_s17), 0  ;;  %p54_p5 = scmp.eq.s32.totalorder %s1192_s15, 0 }
   0xd   : > { %p1664_p4 = por %p48_p2, %p47_p1  ;;  %s37_s20 = ssub.s32 %s1577_s13, %s2440_s17 }
   0xe   : > { %p107_p6 = scmp.eq.s32.totalorder %s1192_s15, 1  ;;  %p38_p7 = scmp.eq.s32.totalorder %s37_s20, 0 }
   0xf   : > { %p1670_p8 = por %p54_p5, %p53_p3  ;;  %p113_p10 = scmp.eq.s32.totalorder %s1193_s16, 1 }
  0x10   : > { %p1674_p9 = por %p107_p6, %p47_p1  ;;  %p1261_p13 = scmp.lt.s32.totalorder %s1581_s14, 2 }
  0x11   : > { %s2414_s21 = scalar_select %p1670_p8, 1, 0 }
  0x12   : > { %s2415_s22 = scalar_select %p1674_p9, 1, 0 }
  0x13   : > { %s1679_s23 = scalar_select %p38_p7, %s1569_s11, %s40_s18  }
  0x14   : > { %p1681_p11 = por %p113_p10, %p53_p3  ;;  %s1688_s25 = sand.u32 1, %s1569_s11  }
  0x15   : > { %s1196_s26 = sshll.u32 %s1688_s25, 2  ;;  %s1197_s27 = sshll.u32 %s1577_s13, 6 }
  0x16   : > { %s2416_s24 = scalar_select %p1681_p11, 1, 0 }
  0x17   : > { %s1697_s30 = scalar_lea.hbm %s2408_s0, %s1197_s27  ;;  %s137_s3 = scalar_lea.vmem [#allocation3], %s1196_s26 }
  0x18   : > { %s144_s4 = sshll.u32 %s137_s3, 4  ;;  %p1705_p0 = pnand %p1261_p13, %p1664_p4  ;;  %s1701_s4 = int_to_ptr.vmem [resolvable:$true] %s144_s4 }
  0x19   : > { %s134_s6 = scalar_lea.sflag [#allocation4], %s1688_s25  ;;  %s1423_s7 = scalar_lea.hbm %s1697_s30, 64 }
  0x1a   : > { %p1424_p3 = scmp.ne.s32.totalorder %s1697_s30, %s1423_s7  ;;  %p1425_p5 = pneg %p1705_p0 }
  0x1b   : > { %s1428_s16 = scalar_lea.hbm %s2408_s0, 128  ;;  %p1429_p4 = scmp.lt.u32.totalorder %s1697_s30, %s2408_s0 }
  0x1c   : > { %p1426_p6 = pnand %p1425_p5, %p1424_p3  ;;  %p1430_p10 = scmp.lt.u32.totalorder %s1428_s16, %s1423_s7 }
  0x1d   : > { %p1432_p12 = scmp.lt.u32.totalorder %s1423_s7, %s1697_s30 }
  0x1e   : > { %p1427_p7 = pneg %p1426_p6  ;;  %p1431_p13 = por %p1430_p10, %p1429_p4 }
  0x20   : > { %p1433_p1 = por %p1432_p12, %p1431_p13 }
  0x22   : > { %p1434_p2 = pnand %p1433_p1, %p1427_p7 }
  0x24   : > { %1437 = shalt.err (!%p1434_p2)
}
  0x25   : > { %s1438_s20 = scalar_lea.vmem %s1701_s4, 64  ;;  %s1595_s28 = smov [#allocation3]  }
  0x26   : > { %p1439_p3 = scmp.ne.s32.totalorder %s1701_s4, %s1438_s20  ;;  %s1443_s29 = sshll.u32 %s1595_s28, 4  ;;  %s1444_s29 = int_to_ptr.vmem [resolvable:$false] %s1443_s29 }
  0x27   : > { %s1445_s3 = scalar_lea.vmem %s1444_s29, 128  ;;  %p1446_p9 = scmp.lt.s32.totalorder %s1701_s4, %s1444_s29 }
  0x28   : > { %p1441_p6 = pnand %p1439_p3, %p1425_p5  ;;  %p1447_p4 = scmp.lt.s32.totalorder %s1445_s3, %s1438_s20 }
  0x2a   : > { %p1442_p11 = pneg %p1441_p6  ;;  %p1448_p10 = por %p1447_p4, %p1446_p9 }
  0x2c   : > { %p1449_p12 = pnand %p1448_p10, %p1442_p11 }
  0x2e   : > { %1452 = shalt.err (!%p1449_p12)
}
  0x2f   : > { %1253 = dma.hbm_to_vmem [thread:$0]  (!%p1705_p0), %s1697_s30, 64, %s1701_s4, %s134_s6  }
  0x30   : > { %p2418_p1 = scmp.lt.s32.totalorder %s1581_s14, 3  ;;  %p2419_p2 = scmp.ge.s32.totalorder %s1581_s14, 1 }
  0x31   : > { %s1750_s16 = scalar_lea.hbm %s2409_s1, %s1197_s27  ;;  %s155_s18 = scalar_lea.vmem [#allocation6], %s1196_s26 }
  0x32   : > { %p1741_p7 = pnand %p2419_p2, %p2418_p1  ;;  %s163_s19 = sshll.u32 %s155_s18, 4  ;;  %s164_s19 = int_to_ptr.vmem [resolvable:$true] %s163_s19 }
  0x33   : > { %s152_s30 = scalar_lea.sflag [#allocation7], %s1688_s25  ;;  %s1453_s4 = scalar_lea.hbm %s1750_s16, 64 }
  0x34   : > { %s2420_s7 = scalar_select %p1741_p7, 1, 0 }
  0x35   : > { %p1454_p9 = scmp.ne.s32.totalorder %s1750_s16, %s1453_s4  ;;  %s1458_s27 = scalar_lea.hbm %s2409_s1, 128 }
  0x36   : > { %p1459_p3 = scmp.lt.u32.totalorder %s1750_s16, %s2409_s1  ;;  %p1460_p6 = scmp.lt.u32.totalorder %s1458_s27, %s1453_s4 }
  0x37   : > { %p1456_p11 = pnand %p1454_p9, %p1425_p5  ;;  %p1462_p10 = scmp.lt.u32.totalorder %s1453_s4, %s1750_s16 }
  0x38   : > { %p1461_p4 = por %p1460_p6, %p1459_p3 }
  0x39   : > { %p1457_p13 = pneg %p1456_p11 }
  0x3a   : > { %p1463_p12 = por %p1462_p10, %p1461_p4 }
  0x3c   : > { %p1464_p1 = pnand %p1463_p12, %p1457_p13 }
  0x3e   : > { %1467 = shalt.err (!%p1464_p1)
}
  0x3f   : > { %s1468_s25 = scalar_lea.vmem %s164_s19, 64  ;;  %s1596_s26 = smov [#allocation6]  }
  0x40   : > { %p1469_p2 = scmp.ne.s32.totalorder %s164_s19, %s1468_s25  ;;  %s1473_s3 = sshll.u32 %s1596_s26, 4  ;;  %s1474_s3 = int_to_ptr.vmem [resolvable:$false] %s1473_s3 }
  0x41   : > { %s1475_s8 = scalar_lea.vmem %s1474_s3, 128  ;;  %p1476_p8 = scmp.lt.s32.totalorder %s164_s19, %s1474_s3 }
  0x42   : > { %p1471_p9 = pnand %p1469_p2, %p1425_p5  ;;  %p1477_p7 = scmp.lt.s32.totalorder %s1475_s8, %s1468_s25 }
  0x44   : > { %p1472_p11 = pneg %p1471_p9  ;;  %p1478_p3 = por %p1477_p7, %p1476_p8 }
  0x46   : > { %p1479_p6 = pnand %p1478_p3, %p1472_p11 }
  0x48   : > { %1482 = shalt.err (!%p1479_p6)
}
  0x49   : > { %1256 = dma.hbm_to_vmem [thread:$0]  (!%p1705_p0), %s1750_s16, 64, %s164_s19, %s152_s30  }
  0x4a   : > { %p2421_p13 = scmp.ne.s32.totalorder %s2420_s7, 0 }
  0x4b   : > { %s1777_s15 = sand.u32 (!%p2421_p13), 1, %s1565_s10   ;;  %p2422_p8 = scmp.ne.s32.totalorder (!%p2421_p13), %s2414_s21, 0 }
  0x4c   : > { %172 = sbr.rel (%p2421_p13) target bundleno = 1556 (0x614), region = 28  ;;  %s1780_s18 = sshll.u32 (!%p2421_p13), %s1777_s15, 2 }
  0x4d   : > { %s175_s4 = scalar_lea.sflag (!%p2421_p13), [#allocation4], %s1777_s15  ;;  %s178_s6 = scalar_lea.vmem (!%p2421_p13), [#allocation3], %s1780_s18 }
  0x53   : > { %1548 = dma.done.wait (%p2422_p8), %s175_s4, 64  }
  0x54   : > { %1550 = vsyncadd (%p2422_p8), %s175_s4, 4294967232  ;;  %s184_s5 = scalar_lea.sflag [#allocation7], %s1777_s15  ;;  %s187_s7 = scalar_lea.vmem [#allocation6], %s1780_s18 }
  0x55   : > { %1552 = dma.done.wait (%p2422_p8), %s184_s5, 64  }
  0x56   : > { %1554 = vsyncadd (%p2422_p8), %s184_s5, 4294967232  ;;  %v1597_v0 = vmov 0   ;;  %v214_v1 = vld [vmem:[%s178_s6] sm:$0xf]  ;;  %vm236_vm0 = vcmask 1040384   ;;  %vm238_vm1 = vcmask 1041408   ;;  %v358_v18 = vlaneseq }
  0x57   : > { %1346 = vset.pattern.permute.xlu1 %v1597_v0  ;;  %v215_v2 = vmul.f32 0.5, %v214_v1  ;;  %v222_v3 = vrot.slane %v214_v1, 1  ;;  %vm240_vm2 = vcmask 1042432   ;;  %vm242_vm3 = vcmask 1043456   ;;  %v938_v38 = vld [vmem:[%s187_s7] sm:$0xf] }
  0x58   : > { %vm244_vm4 = vcmask 1044480   ;;  %v1598_v17 = vmov 1   ;;  %v1809_v19 = vand.u32 127, %v358_v18  ;;  %v1599_v22 = vmov 3   ;;  %s212_s16 = scalar_lea.vmem [#allocation8], %s1780_s18 }
  0x59   : > { %v217_v4 = vrot.slane %v215_v2, 2  ;;  %v1795_v5 = vmul.f32 %v222_v3, %v214_v1  ;;  %v1600_v37 = vmov 2   ;;  %v1895_v39 = vsel %vm242_vm3, %v938_v38, 0.0  }
  0x5a   : > { %vm942_vm5 = vcmp.ne.f32.partialorder %v1895_v39, 0.0  ;;  %v1917_v41 = vshrl.u32 %v358_v18, 7  ;;  %v1601_v43 = vmov 4  }
  0x5b   : > { %v1797_v6 = vsub.f32 %v214_v1, %v217_v4  ;;  %v1799_v7 = vadd.f32 %v217_v4, %v214_v1  ;;  %v234_v11 = vrot.slane %v1795_v5, 6  ;;  %v1902_v40 = vsel %vm942_vm5, %v1895_v39, -inf  }
  0x5c   : > { %v360_v42 = vsub.s32 0, %v1917_v41  ;;  %v560_v46 = vsub.s32 1, %v1917_v41 }
  0x5d   : > { %v226_v8 = vrot.slane %v1799_v7, 7  ;;  %v229_v9 = vrot.slane %v1797_v6, 7  ;;  %v231_v10 = vrot.slane %v1799_v7, 6 }
  0x5e   : > { %v1925_v44 = vrot.slane %v1799_v7, %v360_v42  ;;  %v1928_v45 = vrot.slane %v1797_v6, %v360_v42  ;;  %v1944_v52 = vrot.slane %v1799_v7, %v560_v46 }
  0x5f   : > { %v237_v12 = vsel %vm236_vm0, %v1797_v6, %v226_v8 }
  0x60   : > { %v239_v13 = vsel %vm238_vm1, %v237_v12, %v229_v9 }
  0x61   : > { %v241_v14 = vsel %vm240_vm2, %v239_v13, %v231_v10 }
  0x62   : > { %v243_v15 = vsel %vm242_vm3, %v241_v14, %v234_v11 }
  0x63   : > { %v245_v16 = vsel %vm244_vm4, %v243_v15, 0.0 }
  0x64   : > { %246 = vxpose.xlu0.b32.start.end [1/1] (short) %v245_v16, 128 }
  0x8d   : > { %1345 = vset.pattern.permute.xlu0 %v1598_v17 }
  0xe4   : > { %v1811_v20 = vpop.trf.xlu0 }
  0xe5   : > { %379 = vperm.xlu1 %1346, %v1811_v20   ;;  %280 = vperm.xlu0 %1345, %v1811_v20  }
  0xe8   : > { %v1815_v21 = vpop.trf.xlu0 }
  0xe9   : > { %1347 = vset.pattern.permute.xlu1 %v1599_v22  ;;  %1350 = vset.pattern.permute.xlu0 %v1599_v22 }
  0xea   : > { %495 = vperm.xlu1 %1347, %v1811_v20   ;;  %499 = vperm.xlu0 %1350, %v1815_v21  }
  0xec   : > { %v1821_v23 = vpop.trf.xlu0 }
  0xee   : > { %1348 = vset.pattern.permute.xlu1 %v1598_v17 }
  0xef   : > { %285 = vperm.xlu1 %1348, %v1815_v21  }
  0xf0   : > { %v1825_v24 = vpop.trf.xlu0 }
  0xf3   : > { %1349 = vset.pattern.permute.xlu1 %v1597_v0 }
  0xf4   : > { %383 = vperm.xlu1 %1349, %v1815_v21   ;;  %v1829_v25 = vpop.trf.xlu0 }
  0xf5   : > { %511 = vperm.xlu0 %1350, %v1829_v25  }
  0xf8   : > { %1351 = vset.pattern.permute.xlu1 %v1598_v17  ;;  %v1833_v26 = vpop.trf.xlu0 }
  0xf9   : > { %290 = vperm.xlu1 %1351, %v1821_v23  }
  0xfc   : > { %v1836_v27 = vpop.trf.xlu0 }
  0xfd   : > { %1352 = vset.pattern.permute.xlu1 %v1597_v0  ;;  %519 = vperm.xlu0 %1350, %v1836_v27  }
  0xfe   : > { %387 = vperm.xlu1 %1352, %v1821_v23  }
 0x100   : > { %v1841_v28 = vpop.trf.xlu0 }
 0x102   : > { %1353 = vset.pattern.permute.xlu1 %v1599_v22 }
 0x103   : > { %503 = vperm.xlu1 %1353, %v1821_v23  }
 0x104   : > { %v1845_v29 = vpop.trf.xlu0 }
 0x105   : > { %527 = vperm.xlu0 %1350, %v1845_v29  }
 0x107   : > { %1354 = vset.pattern.permute.xlu1 %v1598_v17 }
 0x108   : > { %295 = vperm.xlu1 %1354, %v1825_v24   ;;  %v1850_v30 = vpop.trf.xlu0 }
 0x10c   : > { %1355 = vset.pattern.permute.xlu1 %v1597_v0  ;;  %v1853_v31 = vpop.trf.xlu0 }
 0x10d   : > { %391 = vperm.xlu1 %1355, %v1825_v24   ;;  %535 = vperm.xlu0 %1350, %v1853_v31  }
 0x110   : > { %v1857_v32 = vpop.trf.xlu0 }
 0x111   : > { %1356 = vset.pattern.permute.xlu1 %v1599_v22  ;;  %1378 = vset.pattern.permute.xlu0 %v1597_v0 }
 0x112   : > { %507 = vperm.xlu1 %1356, %v1825_v24  }
 0x114   : > { %v1862_v33 = vpop.trf.xlu0 }
 0x115   : > { %427 = vperm.xlu0 %1378, %v1862_v33  }
 0x116   : > { %1357 = vset.pattern.permute.xlu1 %v1598_v17 }
 0x117   : > { %300 = vperm.xlu1 %1357, %v1829_v25  }
 0x118   : > { %v1867_v34 = vpop.trf.xlu0 }
 0x119   : > { %1379 = vset.pattern.permute.xlu0 %v1599_v22 }
 0x11a   : > { %543 = vperm.xlu0 %1379, %v1862_v33  }
 0x11b   : > { %1358 = vset.pattern.permute.xlu1 %v1597_v0 }
 0x11c   : > { %395 = vperm.xlu1 %1358, %v1829_v25   ;;  %v1873_v35 = vpop.trf.xlu0 }
 0x11e   : > { %551 = vperm.xlu0 %1379, %v1873_v35  }
 0x120   : > { %1359 = vset.pattern.permute.xlu1 %v1598_v17  ;;  %v1877_v36 = vpop.trf.xlu0 }
 0x121   : > { %305 = vperm.xlu1 %1359, %v1833_v26  }
 0x122   : > { %1385 = vset.pattern.permute.xlu0 %v1597_v0 }
 0x123   : > { %439 = vperm.xlu0 %1385, %v1877_v36  }
 0x125   : > { %1360 = vset.pattern.permute.xlu1 %v1597_v0 }
 0x126   : > { %399 = vperm.xlu1 %1360, %v1833_v26  }
 0x127   : > { %1388 = vset.pattern.permute.xlu0 %v1600_v37 }
 0x12a   : > { %1361 = vset.pattern.permute.xlu1 %v1599_v22 }
 0x12b   : > { %515 = vperm.xlu1 %1361, %v1833_v26  }
 0x12f   : > { %1362 = vset.pattern.permute.xlu1 %v1598_v17 }
 0x130   : > { %310 = vperm.xlu1 %1362, %v1836_v27  }
 0x134   : > { %1363 = vset.pattern.permute.xlu1 %v1597_v0 }
 0x135   : > { %403 = vperm.xlu1 %1363, %v1836_v27  }
 0x139   : > { %1364 = vset.pattern.permute.xlu1 %v1598_v17 }
 0x13a   : > { %315 = vperm.xlu1 %1364, %v1841_v28  }
 0x13e   : > { %1365 = vset.pattern.permute.xlu1 %v1597_v0 }
 0x13f   : > { %407 = vperm.xlu1 %1365, %v1841_v28  }
 0x142   : > { %944 = vmax.xlane.f32.xlu0 %v1902_v40 }
 0x143   : > { %1366 = vset.pattern.permute.xlu1 %v1599_v22 }
 0x144   : > { %523 = vperm.xlu1 %1366, %v1841_v28  }
 0x148   : > { %1367 = vset.pattern.permute.xlu1 %v1598_v17 }
 0x149   : > { %320 = vperm.xlu1 %1367, %v1845_v29  }
 0x14d   : > { %1368 = vset.pattern.permute.xlu1 %v1597_v0 }
 0x14e   : > { %411 = vperm.xlu1 %1368, %v1845_v29  }
 0x152   : > { %1369 = vset.pattern.permute.xlu1 %v1598_v17 }
 0x153   : > { %325 = vperm.xlu1 %1369, %v1850_v30  }
 0x157   : > { %1370 = vset.pattern.permute.xlu1 %v1597_v0 }
 0x158   : > { %415 = vperm.xlu1 %1370, %v1850_v30   ;;  %579 = vperm.xlu0 %1388, %v1811_v20  }
 0x15c   : > { %1371 = vset.pattern.permute.xlu1 %v1599_v22  ;;  %619 = vperm.xlu0 %1388, %v1853_v31  }
 0x15d   : > { %531 = vperm.xlu1 %1371, %v1850_v30  }
 0x160   : > { %1390 = vset.pattern.permute.xlu0 %v1601_v43 }
 0x161   : > { %1372 = vset.pattern.permute.xlu1 %v1598_v17  ;;  %715 = vperm.xlu0 %1390, %v1815_v21  }
 0x162   : > { %330 = vperm.xlu1 %1372, %v1853_v31  }
 0x164   : > { %v380_v47 = vpop.permute.xlu1 %379  ;;  %v281_v48 = vpop.permute.xlu0 %280 }
 0x165   : > { %v446_v49 = vmax.f32 %v380_v47, %v1928_v45  ;;  %v362_v50 = vmin.f32 %v281_v48, %v1925_v44  ;;  %727 = vperm.xlu0 %1390, %v1829_v25  }
 0x166   : > { %1373 = vset.pattern.permute.xlu1 %v1597_v0 }
 0x167   : > { %v1938_v51 = vsub.f32 %v362_v50, %v446_v49  ;;  %419 = vperm.xlu1 %1373, %v1853_v31  }
 0x169   : > { %v1946_v53 = vpop.permute.xlu1 %495  ;;  %735 = vperm.xlu0 %1390, %v1836_v27   ;;  %v1949_v54 = vpop.permute.xlu0 %499 }
 0x16a   : > { %v563_v55 = vmin.f32 %v1949_v54, %v1944_v52 }
 0x16b   : > { %1374 = vset.pattern.permute.xlu1 %v1598_v17 }
 0x16c   : > { %335 = vperm.xlu1 %1374, %v1857_v32  }
 0x16d   : > { %743 = vperm.xlu0 %1390, %v1845_v29  }
 0x16e   : > { %v286_v56 = vpop.permute.xlu1 %285 }
 0x16f   : > { %v363_v58 = vmin.f32 %v286_v56, %v1925_v44 }
 0x170   : > { %1375 = vset.pattern.permute.xlu1 %v1597_v0 }
 0x171   : > { %423 = vperm.xlu1 %1375, %v1857_v32   ;;  %751 = vperm.xlu0 %1390, %v1853_v31  }
 0x173   : > { %v384_v57 = vpop.permute.xlu1 %383 }
 0x174   : > { %v447_v59 = vmax.f32 %v384_v57, %v1928_v45  ;;  %v1961_v60 = vpop.permute.xlu0 %511 }
 0x175   : > { %1376 = vset.pattern.permute.xlu1 %v1599_v22  ;;  %759 = vperm.xlu0 %1390, %v1862_v33   ;;  %v566_v61 = vmin.f32 %v1961_v60, %v1944_v52 }
 0x176   : > { %v1967_v62 = vsub.f32 %v363_v58, %v447_v59  ;;  %539 = vperm.xlu1 %1376, %v1857_v32  }
 0x178   : > { %v291_v63 = vpop.permute.xlu1 %290 }
 0x179   : > { %767 = vperm.xlu0 %1390, %v1873_v35   ;;  %v364_v4 = vmin.f32 %v291_v63, %v1925_v44 }
 0x17a   : > { %1377 = vset.pattern.permute.xlu1 %v1598_v17 }
 0x17b   : > { %340 = vperm.xlu1 %1377, %v1862_v33  }
 0x17c   : > { %v1973_v1 = vpop.permute.xlu0 %519 }
 0x17d   : > { %v388_v2 = vpop.permute.xlu1 %387  ;;  %v568_v3 = vmin.f32 %v1973_v1, %v1944_v52 }
 0x17e   : > { %v448_v7 = vmax.f32 %v388_v2, %v1928_v45 }
 0x17f   : > { %345 = vperm.xlu1 %1377, %v1867_v34  }
 0x180   : > { %v1980_v8 = vsub.f32 %v364_v4, %v448_v7 }
 0x182   : > { %v1982_v9 = vpop.permute.xlu1 %503 }
 0x183   : > { %1380 = vset.pattern.permute.xlu1 %v1597_v0 }
 0x184   : > { %431 = vperm.xlu1 %1380, %v1867_v34   ;;  %v1986_v10 = vpop.permute.xlu0 %527 }
 0x187   : > { %v296_v12 = vpop.permute.xlu1 %295 }
 0x188   : > { %1381 = vset.pattern.permute.xlu1 %v1599_v22  ;;  %v365_v15 = vmin.f32 %v296_v12, %v1925_v44 }
 0x189   : > { %547 = vperm.xlu1 %1381, %v1867_v34  }
 0x18c   : > { %v392_v13 = vpop.permute.xlu1 %391  ;;  %v1992_v14 = vpop.permute.xlu0 %535 }
 0x18d   : > { %v449_v16 = vmax.f32 %v392_v13, %v1928_v45  ;;  %1382 = vset.pattern.permute.xlu1 %v1598_v17  ;;  %v572_v18 = vmin.f32 %v1992_v14, %v1944_v52 }
 0x18e   : > { %350 = vperm.xlu1 %1382, %v1873_v35  }
 0x18f   : > { %v2000_v31 = vsub.f32 %v365_v15, %v449_v16 }
 0x191   : > { %v2002_v38 = vpop.permute.xlu1 %507 }
 0x192   : > { %1383 = vset.pattern.permute.xlu1 %v1597_v0  ;;  %v565_v54 = vmin.f32 %v2002_v38, %v1944_v52 }
 0x193   : > { %435 = vperm.xlu1 %1383, %v1873_v35  }
 0x194   : > { %v2006_v42 = vpop.permute.xlu0 %427 }
 0x195   : > { %v458_v47 = vmax.f32 %v2006_v42, %v1928_v45 }
 0x196   : > { %v301_v48 = vpop.permute.xlu1 %300 }
 0x197   : > { %1384 = vset.pattern.permute.xlu1 %v1598_v17  ;;  %v366_v0 = vmin.f32 %v301_v48, %v1925_v44 }
 0x198   : > { %355 = vperm.xlu1 %1384, %v1877_v36  }
 0x199   : > { %v2012_v49 = vpop.permute.xlu0 %543 }
 0x19b   : > { %v396_v56 = vpop.permute.xlu1 %395 }
 0x19c   : > { %v450_v57 = vmax.f32 %v396_v56, %v1928_v45  ;;  %1386 = vset.pattern.permute.xlu1 %v1599_v22 }
 0x19d   : > { %555 = vperm.xlu1 %1386, %v1877_v36   ;;  %v2020_v58 = vpop.permute.xlu0 %551 }
 0x19e   : > { %v2022_v59 = vsub.f32 %v366_v0, %v450_v57 }
 0x1a0   : > { %v306_v63 = vpop.permute.xlu1 %305 }
 0x1a1   : > { %v367_v2 = vmin.f32 %v306_v63, %v1925_v44  ;;  %1387 = vset.pattern.permute.xlu1 %v1600_v37 }
 0x1a2   : > { %583 = vperm.xlu1 %1387, %v1815_v21   ;;  %v2029_v4 = vpop.permute.xlu0 %439 }
 0x1a3   : > { %v461_v22 = vmax.f32 %v2029_v4, %v1928_v45 }
 0x1a5   : > { %v400_v7 = vpop.permute.xlu1 %399 }
 0x1a6   : > { %v451_v12 = vmax.f32 %v400_v7, %v1928_v45  ;;  %587 = vperm.xlu1 %1387, %v1821_v23  }
 0x1a8   : > { %v2035_v13 = vsub.f32 %v367_v2, %v451_v12 }
 0x1aa   : > { %v2037_v15 = vpop.permute.xlu1 %515  ;;  %591 = vperm.xlu1 %1387, %v1825_v24   ;;  %v483_v60 = vmax.f32 %v2035_v13, 0.0 }
 0x1ab   : > { %v567_v37 = vmin.f32 %v2037_v15, %v1944_v52 }
 0x1ae   : > { %595 = vperm.xlu1 %1387, %v1829_v25  }
 0x1af   : > { %v311_v21 = vpop.permute.xlu1 %310 }
 0x1b0   : > { %v368_v16 = vmin.f32 %v311_v21, %v1925_v44 }
 0x1b2   : > { %599 = vperm.xlu1 %1387, %v1833_v26  }
 0x1b4   : > { %v404_v48 = vpop.permute.xlu1 %403 }
 0x1b5   : > { %v452_v56 = vmax.f32 %v404_v48, %v1928_v45 }
 0x1b6   : > { %603 = vperm.xlu1 %1387, %v1836_v27  }
 0x1b7   : > { %v2047_v0 = vsub.f32 %v368_v16, %v452_v56 }
 0x1b9   : > { %v316_v57 = vpop.permute.xlu1 %315 }
 0x1ba   : > { %v369_v63 = vmin.f32 %v316_v57, %v1925_v44  ;;  %607 = vperm.xlu1 %1387, %v1841_v28  }
 0x1be   : > { %v408_v2 = vpop.permute.xlu1 %407  ;;  %611 = vperm.xlu1 %1387, %v1845_v29  }
 0x1bf   : > { %v453_v25 = vmax.f32 %v408_v2, %v1928_v45 }
 0x1c1   : > { %v2053_v7 = vsub.f32 %v369_v63, %v453_v25 }
 0x1c2   : > { %615 = vperm.xlu1 %1387, %v1850_v30  }
 0x1c3   : > { %v2056_v12 = vpop.permute.xlu1 %523 }
 0x1c4   : > { %v2423_v1 = vmin.f32 %v2056_v12, %v1944_v52 }
 0x1c6   : > { %623 = vperm.xlu1 %1387, %v1857_v32  }
 0x1c8   : > { %v321_v21 = vpop.permute.xlu1 %320 }
 0x1c9   : > { %v370_v16 = vmin.f32 %v321_v21, %v1925_v44  ;;  %v2072_v21 = vrot.slane %v1797_v6, %v560_v46 }
 0x1ca   : > { %627 = vperm.xlu1 %1387, %v1862_v33  }
 0x1cd   : > { %v412_v48 = vpop.permute.xlu1 %411 }
 0x1ce   : > { %v454_v29 = vmax.f32 %v412_v48, %v1928_v45  ;;  %631 = vperm.xlu1 %1387, %v1867_v34  }
 0x1cf   : > { %v945_v56 = vpop.xlane.xlu0 %944 }
 0x1d0   : > { %v2065_v57 = vsub.f32 %v370_v16, %v454_v29  ;;  %v946_v63 = vrot.slane %v945_v56, 4  ;;  %v562_v16 = vmin.f32 %v1946_v53, %v1944_v52 }
 0x1d2   : > { %v326_v2 = vpop.permute.xlu1 %325  ;;  %635 = vperm.xlu1 %1387, %v1873_v35   ;;  %v947_v25 = vmax.f32 %v945_v56, %v946_v63 }
 0x1d3   : > { %v371_v17 = vmin.f32 %v326_v2, %v1925_v44 }
 0x1d4   : > { %v948_v33 = vrot.slane %v947_v25, 2 }
 0x1d6   : > { %639 = vperm.xlu1 %1387, %v1877_v36   ;;  %v949_v48 = vmax.f32 %v947_v25, %v948_v33  ;;  %v478_v25 = vmax.f32 %v1938_v51, 0.0 }
 0x1d7   : > { %v416_v50 = vpop.permute.xlu1 %415  ;;  %v580_v11 = vpop.permute.xlu0 %579 }
 0x1d8   : > { %v455_v29 = vmax.f32 %v416_v50, %v1928_v45  ;;  %v646_v35 = vmax.f32 %v580_v11, %v2072_v21  ;;  %v950_v56 = vrot.slane %v949_v48, 1 }
 0x1da   : > { %v2079_v63 = vsub.f32 %v371_v17, %v455_v29  ;;  %v662_v2 = vsub.f32 %v562_v16, %v646_v35  ;;  %1389 = vset.pattern.permute.xlu1 %v1601_v43  ;;  %v951_v6 = vmax.f32 %v949_v48, %v950_v56  ;;  %v776_v35 = vsub.s32 2, %v1917_v41 }
 0x1db   : > { %711 = vperm.xlu1 %1389, %v1811_v20   ;;  %v620_v46 = vpop.permute.xlu0 %619 }
 0x1dc   : > { %v678_v33 = vmax.f32 %v662_v2, 0.0  ;;  %v2084_v27 = vpop.permute.xlu1 %531  ;;  %v656_v53 = vmax.f32 %v620_v46, %v2072_v21  ;;  %1240 = vpush %v951_v6 }
 0x1dd   : > { %v571_v11 = vmin.f32 %v2084_v27, %v1944_v52 }
 0x1de   : > { %v672_v50 = vsub.f32 %v572_v18, %v656_v53  ;;  %v2092_v43 = vmul.f32 %v678_v33, %v478_v25  ;;  %v2111_v25 = vrot.slane %v1795_v5, %v776_v35 }
 0x1df   : > { %719 = vperm.xlu1 %1389, %v1821_v23  }
 0x1e0   : > { %v2095_v20 = vpop.permute.xlu0 %715  ;;  %v688_v23 = vmax.f32 %v672_v50, 0.0 }
 0x1e1   : > { %v331_v51 = vpop.permute.xlu1 %330 }
 0x1e2   : > { %v372_v17 = vmin.f32 %v331_v51, %v1925_v44 }
 0x1e3   : > { %723 = vperm.xlu1 %1389, %v1825_v24  }
 0x1e4   : > { %v2099_v48 = vpop.permute.xlu0 %727 }
 0x1e6   : > { %v420_v16 = vpop.permute.xlu1 %419 }
 0x1e7   : > { %v456_v29 = vmax.f32 %v420_v16, %v1928_v45  ;;  %731 = vperm.xlu1 %1389, %v1833_v26  }
 0x1e8   : > { %v2103_v14 = vpop.permute.xlu0 %735 }
 0x1e9   : > { %v472_v18 = vsub.f32 %v372_v17, %v456_v29 }
 0x1eb   : > { %v488_v56 = vmax.f32 %v472_v18, 0.0  ;;  %v336_v2 = vpop.permute.xlu1 %335  ;;  %739 = vperm.xlu1 %1389, %v1841_v28  }
 0x1ec   : > { %v373_v6 = vmin.f32 %v336_v2, %v1925_v44  ;;  %v2108_v24 = vpop.permute.xlu0 %743 }
 0x1ed   : > { %v704_v46 = vmul.f32 %v688_v23, %v488_v56 }
 0x1ef   : > { %747 = vperm.xlu1 %1389, %v1850_v30  }
 0x1f0   : > { %v424_v26 = vpop.permute.xlu1 %423  ;;  %v752_v33 = vpop.permute.xlu0 %751 }
 0x1f1   : > { %v457_v53 = vmax.f32 %v424_v26, %v1928_v45  ;;  %v788_v50 = vadd.f32 %v2111_v25, %v752_v33 }
 0x1f3   : > { %v2116_v51 = vsub.f32 %v373_v6, %v457_v53  ;;  %v804_v17 = vsub.f32 %v788_v50, %v704_v46  ;;  %755 = vperm.xlu1 %1389, %v1857_v32  }
 0x1f5   : > { %v836_v28 = vmax.f32 %v804_v17, 1e-30  ;;  %v2119_v16 = vpop.permute.xlu1 %539  ;;  %vm820_vm6 = vcmp.gt.f32.partialorder %v804_v17, 0.0  ;;  %v489_v27 = vmax.f32 %v2116_v51, 0.0 }
 0x1f6   : > { %v573_v5 = vmin.f32 %v2119_v16, %v1944_v52 }
 0x1f7   : > { %1391 = vrcp.f32 %v836_v28  ;;  %763 = vperm.xlu1 %1389, %v1867_v34  }
 0x1fa   : > { %v341_v30 = vpop.permute.xlu1 %340 }
 0x1fb   : > { %v374_v29 = vmin.f32 %v341_v30, %v1925_v44  ;;  %771 = vperm.xlu1 %1389, %v1877_v36  }
 0x1fd   : > { %v2129_v18 = vsub.f32 %v374_v29, %v458_v47 }
 0x1fe   : > { %v346_v32 = vpop.permute.xlu1 %345 }
 0x1ff   : > { %v375_v35 = vmin.f32 %v346_v32, %v1925_v44 }
 0x201   : > { %v1392_v23 = vpop.eup %1391 }
 0x202   : > { %v863_v56 = vmul.f32 %v1392_v23, %v704_v46 }
 0x203   : > { %v432_v2 = vpop.permute.xlu1 %431 }
 0x204   : > { %v2132_v6 = vsel %vm820_vm6, %v863_v56, 0.0  ;;  %v459_v34 = vmax.f32 %v432_v2, %v1928_v45 }
 0x206   : > { %v2135_v26 = vsub.f32 %v375_v35, %v459_v34  ;;  %v779_v34 = vadd.f32 %v2111_v25, %v2095_v20 }
 0x208   : > { %v2137_v33 = vpop.permute.xlu1 %547 }
 0x209   : > { %v575_v36 = vmin.f32 %v2137_v33, %v1944_v52 }
 0x20d   : > { %v351_v42 = vpop.permute.xlu1 %350  ;;  %s2141_s21 = spop %1240 }
 0x20e   : > { %v376_v47 = vmin.f32 %v351_v42, %v1925_v44  ;;  %p953_p0 = scmp.gt.f32.partialorder %s2141_s21, -inf }
 0x212   : > { %v436_v46 = vpop.permute.xlu1 %435 }
 0x213   : > { %v460_v53 = vmax.f32 %v436_v46, %v1928_v45  ;;  %v564_v45 = vmin.f32 %v1982_v9, %v1944_v52  ;;  %v480_v46 = vmax.f32 %v1980_v8, 0.0 }
 0x215   : > { %v2146_v50 = vsub.f32 %v376_v47, %v460_v53 }
 0x217   : > { %v356_v17 = vpop.permute.xlu1 %355 }
 0x218   : > { %v377_v28 = vmin.f32 %v356_v17, %v1925_v44  ;;  %v479_v44 = vmax.f32 %v1967_v62, 0.0 }
 0x21a   : > { %v2152_v30 = vsub.f32 %v377_v28, %v461_v22 }
 0x21c   : > { %v2154_v29 = vpop.permute.xlu1 %555 }
 0x21d   : > { %v577_v32 = vmin.f32 %v2154_v29, %v1944_v52 }
 0x221   : > { %v584_v35 = vpop.permute.xlu1 %583 }
 0x222   : > { %v647_v23 = vmax.f32 %v584_v35, %v2072_v21 }
 0x224   : > { %v663_v56 = vsub.f32 %v563_v55, %v647_v23 }
 0x225   : > { %v588_v2 = vpop.permute.xlu1 %587 }
 0x226   : > { %v679_v4 = vmax.f32 %v663_v56, 0.0  ;;  %v648_v22 = vmax.f32 %v588_v2, %v2072_v21  ;;  %v481_v56 = vmax.f32 %v2000_v31, 0.0 }
 0x228   : > { %v695_v42 = vmul.f32 %v679_v4, %v479_v44  ;;  %v664_v47 = vsub.f32 %v564_v45, %v648_v22  ;;  %v482_v45 = vmax.f32 %v2022_v59, 0.0 }
 0x229   : > { %v592_v53 = vpop.permute.xlu1 %591 }
 0x22a   : > { %v795_v55 = vsub.f32 %v779_v34, %v695_v42  ;;  %v680_v17 = vmax.f32 %v664_v47, 0.0  ;;  %v649_v62 = vmax.f32 %v592_v53, %v2072_v21  ;;  %v782_v34 = vadd.f32 %v2111_v25, %v2099_v48 }
 0x22b   : > { %v484_v48 = vmax.f32 %v2047_v0, 0.0  ;;  %v485_v0 = vmax.f32 %v2053_v7, 0.0  ;;  %v786_v7 = vadd.f32 %v2111_v25, %v2108_v24 }
 0x22c   : > { %v827_v28 = vmax.f32 %v795_v55, 1e-30  ;;  %v665_v9 = vsub.f32 %v565_v54, %v649_v62  ;;  %v2172_v35 = vmul.f32 %v680_v17, %v480_v46  ;;  %vm811_vm7 = vcmp.gt.f32.partialorder %v795_v55, 0.0 }
 0x22d   : > { %v596_v23 = vpop.permute.xlu1 %595 }
 0x22e   : > { %1393 = vrcp.f32 %v827_v28  ;;  %v681_v20 = vmax.f32 %v665_v9, 0.0  ;;  %v650_v2 = vmax.f32 %v596_v23, %v2072_v21 }
 0x230   : > { %v666_v8 = vsub.f32 %v566_v61, %v650_v2  ;;  %v2179_v38 = vmul.f32 %v681_v20, %v481_v56  ;;  %v784_v56 = vadd.f32 %v2111_v25, %v2103_v14 }
 0x231   : > { %v600_v44 = vpop.permute.xlu1 %599 }
 0x232   : > { %v682_v4 = vmax.f32 %v666_v8, 0.0  ;;  %v651_v22 = vmax.f32 %v600_v44, %v2072_v21 }
 0x234   : > { %v698_v31 = vmul.f32 %v682_v4, %v482_v45  ;;  %v667_v47 = vsub.f32 %v567_v37, %v651_v22  ;;  %v2424_v45 = vmin.f32 %v1986_v10, %v1944_v52 }
 0x235   : > { %v604_v46 = vpop.permute.xlu1 %603 }
 0x236   : > { %v798_v61 = vsub.f32 %v782_v34, %v698_v31  ;;  %v683_v53 = vmax.f32 %v667_v47, 0.0  ;;  %v652_v54 = vmax.f32 %v604_v46, %v2072_v21  ;;  %v486_v34 = vmax.f32 %v2065_v57, 0.0 }
 0x238   : > { %v1394_v17 = vpop.eup %1393  ;;  %v830_v59 = vmax.f32 %v798_v61, 1e-30  ;;  %v668_v62 = vsub.f32 %v568_v3, %v652_v54  ;;  %v2193_v28 = vmul.f32 %v683_v53, %v483_v60  ;;  %vm814_vm8 = vcmp.gt.f32.partialorder %v798_v61, 0.0 }
 0x239   : > { %v845_v9 = vmul.f32 %v1394_v17, %v695_v42  ;;  %v608_v15 = vpop.permute.xlu1 %607 }
 0x23a   : > { %1395 = vrcp.f32 %v830_v59  ;;  %v684_v37 = vmax.f32 %v668_v62, 0.0  ;;  %v653_v13 = vmax.f32 %v608_v15, %v2072_v21  ;;  %v487_v62 = vmax.f32 %v2079_v63, 0.0 }
 0x23b   : > { %v2197_v23 = vsel %vm811_vm7, %v845_v9, 0.0  ;;  %v2425_v63 = vmin.f32 %v2012_v49, %v1944_v52 }
 0x23c   : > { %v700_v20 = vmul.f32 %v684_v37, %v484_v48  ;;  %v669_v3 = vsub.f32 %v2423_v1, %v653_v13  ;;  %v760_v1 = vpop.permute.xlu0 %759  ;;  %vm891_vm13 = vcmp.gt.f32.partialorder %v2197_v23, 0.45 }
 0x23d   : > { %v612_v2 = vpop.permute.xlu1 %611 }
 0x23e   : > { %v800_v42 = vsub.f32 %v784_v56, %v700_v20  ;;  %v685_v8 = vmax.f32 %v669_v3, 0.0  ;;  %v654_v55 = vmax.f32 %v612_v2, %v2072_v21 }
 0x240   : > { %v832_v44 = vmax.f32 %v800_v42, 1e-30  ;;  %v670_v4 = vsub.f32 %v2424_v45, %v654_v55  ;;  %v2209_v22 = vmul.f32 %v685_v8, %v485_v0  ;;  %vm816_vm9 = vcmp.gt.f32.partialorder %v800_v42, 0.0 }
 0x241   : > { %v616_v14 = vpop.permute.xlu1 %615  ;;  %v790_v8 = vadd.f32 %v2111_v25, %v760_v1  ;;  %v491_v45 = vmax.f32 %v2135_v26, 0.0 }
 0x242   : > { %1397 = vrcp.f32 %v832_v44  ;;  %v686_v12 = vmax.f32 %v670_v4, 0.0  ;;  %v655_v47 = vmax.f32 %v616_v14, %v2072_v21 }
 0x244   : > { %v1396_v46 = vpop.eup %1395  ;;  %v702_v60 = vmul.f32 %v686_v12, %v486_v34  ;;  %v671_v53 = vsub.f32 %v571_v11, %v655_v47  ;;  %v2426_v34 = vmin.f32 %v2020_v58, %v1944_v52 }
 0x245   : > { %v851_v10 = vmul.f32 %v1396_v46, %v698_v31  ;;  %v624_v54 = vpop.permute.xlu1 %623  ;;  %v768_v46 = vpop.permute.xlu0 %767 }
 0x246   : > { %v802_v17 = vsub.f32 %v786_v7, %v702_v60  ;;  %v687_v59 = vmax.f32 %v671_v53, 0.0  ;;  %v657_v57 = vmax.f32 %v624_v54, %v2072_v21  ;;  %v492_v7 = vmax.f32 %v2146_v50, 0.0 }
 0x247   : > { %v2220_v48 = vsel %vm814_vm8, %v851_v10, 0.0  ;;  %v792_v54 = vadd.f32 %v2111_v25, %v768_v46  ;;  %v1602_v46 = vmov 0.0  }
 0x248   : > { %v834_v9 = vmax.f32 %v802_v17, 1e-30  ;;  %v673_v24 = vsub.f32 %v573_v5, %v657_v57  ;;  %v2225_v37 = vmul.f32 %v687_v59, %v487_v62  ;;  %v490_v5 = vmax.f32 %v2129_v18, 0.0 }
 0x249   : > { %v628_v15 = vpop.permute.xlu1 %627  ;;  %vm818_vm10 = vcmp.gt.f32.partialorder %v802_v17, 0.0  ;;  %v493_v57 = vmax.f32 %v2152_v30, 0.0  ;;  %vm894_vm4 = vcmp.gt.f32.partialorder %v2220_v48, 0.45 }
 0x24a   : > { %1399 = vrcp.f32 %v834_v9  ;;  %v689_v11 = vmax.f32 %v673_v24, 0.0  ;;  %v658_v31 = vmax.f32 %v628_v15, %v2072_v21 }
 0x24c   : > { %v1398_v61 = vpop.eup %1397  ;;  %v674_v13 = vsub.f32 %v2425_v63, %v658_v31  ;;  %v2232_v56 = vmul.f32 %v689_v11, %v489_v27 }
 0x24d   : > { %v855_v3 = vmul.f32 %v1398_v61, %v700_v20  ;;  %v632_v16 = vpop.permute.xlu1 %631 }
 0x24e   : > { %v690_v2 = vmax.f32 %v674_v13, 0.0  ;;  %v659_v51 = vmax.f32 %v632_v16, %v2072_v21 }
 0x24f   : > { %v2236_v0 = vsel %vm816_vm9, %v855_v3, 0.0 }
 0x250   : > { %v706_v55 = vmul.f32 %v690_v2, %v490_v5  ;;  %v675_v49 = vsub.f32 %v575_v36, %v659_v51  ;;  %vm896_vm7 = vcmp.gt.f32.partialorder %v2236_v0, 0.45 }
 0x251   : > { %v636_v44 = vpop.permute.xlu1 %635  ;;  %v912_v0 = vsel %vm896_vm7, 1.0, %v1602_v46 }
 0x252   : > { %v806_v20 = vsub.f32 %v790_v8, %v706_v55  ;;  %v691_v4 = vmax.f32 %v675_v49, 0.0  ;;  %v660_v18 = vmax.f32 %v636_v44, %v2072_v21 }
 0x254   : > { %v1400_v42 = vpop.eup %1399  ;;  %v838_v14 = vmax.f32 %v806_v20, 1e-30  ;;  %v676_v12 = vsub.f32 %v2426_v34, %v660_v18  ;;  %v2247_v47 = vmul.f32 %v691_v4, %v491_v45  ;;  %vm822_vm11 = vcmp.gt.f32.partialorder %v806_v20, 0.0 }
 0x255   : > { %v859_v33 = vmul.f32 %v1400_v42, %v702_v60  ;;  %v640_v36 = vpop.permute.xlu1 %639 }
 0x256   : > { %1401 = vrcp.f32 %v838_v14  ;;  %v692_v26 = vmax.f32 %v676_v12, 0.0  ;;  %v661_v53 = vmax.f32 %v640_v36, %v2072_v21 }
 0x257   : > { %v2251_v10 = vsel %vm818_vm10, %v859_v33, 0.0  ;;  %v907_v33 = vsel %vm891_vm13, 1.0, %v1602_v46  ;;  %vm900_vm13 = vcmp.gt.f32.partialorder %v2132_v6, 0.45 }
 0x258   : > { %v708_v59 = vmul.f32 %v692_v26, %v492_v7  ;;  %v677_v58 = vsub.f32 %v577_v32, %v661_v53  ;;  %vm898_vm10 = vcmp.gt.f32.partialorder %v2251_v10, 0.45  ;;  %v916_v10 = vsel %vm900_vm13, 1.0, %v1602_v46 }
 0x25a   : > { %v808_v62 = vsub.f32 %v792_v54, %v708_v59  ;;  %v693_v50 = vmax.f32 %v677_v58, 0.0  ;;  %v712_v60 = vpop.permute.xlu1 %711 }
 0x25b   : > { %v778_v17 = vadd.f32 %v2111_v25, %v712_v60 }
 0x25c   : > { %v840_v9 = vmax.f32 %v808_v62, 1e-30  ;;  %v2259_v24 = vmul.f32 %v693_v50, %v493_v57  ;;  %vm824_vm12 = vcmp.gt.f32.partialorder %v808_v62, 0.0 }
 0x25d   : > { %v794_v21 = vsub.f32 %v778_v17, %v2092_v43 }
 0x25e   : > { %1403 = vrcp.f32 %v840_v9  ;;  %v720_v15 = vpop.permute.xlu1 %719 }
 0x25f   : > { %v826_v27 = vmax.f32 %v794_v21, 1e-30  ;;  %v780_v11 = vadd.f32 %v2111_v25, %v720_v15  ;;  %vm810_vm14 = vcmp.gt.f32.partialorder %v794_v21, 0.0 }
 0x260   : > { %v1402_v31 = vpop.eup %1401 }
 0x261   : > { %v867_v52 = vmul.f32 %v1402_v31, %v706_v55  ;;  %1405 = vrcp.f32 %v826_v27  ;;  %v796_v30 = vsub.f32 %v780_v11, %v2172_v35 }
 0x262   : > { %v724_v29 = vpop.permute.xlu1 %723 }
 0x263   : > { %v2264_v32 = vsel %vm822_vm11, %v867_v52, 0.0  ;;  %v828_v61 = vmax.f32 %v796_v30, 1e-30  ;;  %v781_v63 = vadd.f32 %v2111_v25, %v724_v29  ;;  %vm812_vm0 = vcmp.gt.f32.partialorder %v796_v30, 0.0 }
 0x265   : > { %1407 = vrcp.f32 %v828_v61  ;;  %v797_v13 = vsub.f32 %v781_v63, %v2179_v38  ;;  %v910_v63 = vsel %vm894_vm4, 1.0, %v1602_v46 }
 0x266   : > { %v732_v1 = vpop.permute.xlu1 %731 }
 0x267   : > { %v829_v3 = vmax.f32 %v797_v13, 1e-30  ;;  %v783_v16 = vadd.f32 %v2111_v25, %v732_v1  ;;  %vm813_vm2 = vcmp.gt.f32.partialorder %v797_v13, 0.0 }
 0x268   : > { %v1404_v5 = vpop.eup %1403 }
 0x269   : > { %v871_v2 = vmul.f32 %v1404_v5, %v708_v59  ;;  %1409 = vrcp.f32 %v829_v3  ;;  %v799_v51 = vsub.f32 %v783_v16, %v2193_v28 }
 0x26a   : > { %v740_v8 = vpop.permute.xlu1 %739 }
 0x26b   : > { %v1406_v55 = vpop.eup %1405  ;;  %v2270_v49 = vsel %vm824_vm12, %v871_v2, 0.0  ;;  %v831_v44 = vmax.f32 %v799_v51, 1e-30  ;;  %v785_v45 = vadd.f32 %v2111_v25, %v740_v8  ;;  %vm815_vm5 = vcmp.gt.f32.partialorder %v799_v51, 0.0 }
 0x26c   : > { %v843_v20 = vmul.f32 %v1406_v55, %v2092_v43  ;;  %v914_v55 = vsel %vm898_vm10, 1.0, %v1602_v46 }
 0x26d   : > { %1411 = vrcp.f32 %v831_v44  ;;  %v801_v4 = vsub.f32 %v785_v45, %v2209_v22 }
 0x26e   : > { %v874_v18 = vsel %vm810_vm14, %v843_v20, 0.0  ;;  %v748_v42 = vpop.permute.xlu1 %747 }
 0x26f   : > { %v1408_v14 = vpop.eup %1407  ;;  %vm890_vm15 = vcmp.gt.f32.partialorder %v874_v18, 0.45  ;;  %v833_v34 = vmax.f32 %v801_v4, 1e-30  ;;  %v787_v12 = vadd.f32 %v2111_v25, %v748_v42  ;;  %vm817_vm8 = vcmp.gt.f32.partialorder %v801_v4, 0.0 }
 0x270   : > { %v906_v7 = vsel %vm890_vm15, 1.0, %v1602_v46  ;;  %v847_v43 = vmul.f32 %v1408_v14, %v2172_v35 }
 0x271   : > { %v922_v36 = vpack.c.bf16 %v907_v33, %v906_v7  ;;  %1413 = vrcp.f32 %v833_v34  ;;  %v803_v23 = vsub.f32 %v787_v12, %v2225_v37 }
 0x272   : > { %v876_v26 = vsel %vm812_vm0, %v847_v43, 0.0  ;;  %v756_v53 = vpop.permute.xlu1 %755  ;;  %vm902_vm0 = vcmp.gt.f32.partialorder %v2264_v32, 0.45 }
 0x273   : > { %v1410_v54 = vpop.eup %1409  ;;  %930 = vst [vmem:[#allocation2] sm:$0xff] %v922_v36  ;;  %v835_v59 = vmax.f32 %v803_v23, 1e-30  ;;  %v789_v58 = vadd.f32 %v2111_v25, %v756_v53  ;;  %vm892_vm1 = vcmp.gt.f32.partialorder %v876_v26, 0.45  ;;  %vm819_vm11 = vcmp.gt.f32.partialorder %v803_v23, 0.0 }
 0x274   : > { %v849_v57 = vmul.f32 %v1410_v54, %v2179_v38  ;;  %v908_v21 = vsel %vm892_vm1, 1.0, %v1602_v46  ;;  %v918_v6 = vsel %vm902_vm0, 1.0, %v1602_v46  ;;  %v2427_v23 = vmov %v1895_v39 }
 0x275   : > { %1415 = vrcp.f32 %v835_v59  ;;  %v805_v62 = vsub.f32 %v789_v58, %v2232_v56 }
 0x276   : > { %v877_v35 = vsel %vm813_vm2, %v849_v57, 0.0  ;;  %v764_v50 = vpop.permute.xlu1 %763 }
 0x277   : > { %v1412_v60 = vpop.eup %1411  ;;  %vm893_vm3 = vcmp.gt.f32.partialorder %v877_v35, 0.45  ;;  %v837_v17 = vmax.f32 %v805_v62, 1e-30  ;;  %v791_v9 = vadd.f32 %v2111_v25, %v764_v50  ;;  %vm821_vm14 = vcmp.gt.f32.partialorder %v805_v62, 0.0 }
 0x278   : > { %v909_v15 = vsel %vm893_vm3, 1.0, %v1602_v46  ;;  %v853_v38 = vmul.f32 %v1412_v60, %v2193_v28  ;;  %vm904_vm3 = vcmp.gt.f32.partialorder %v2270_v49, 0.45 }
 0x279   : > { %v923_v27 = vpack.c.bf16 %v909_v15, %v908_v21  ;;  %1417 = vrcp.f32 %v837_v17  ;;  %v807_v11 = vsub.f32 %v791_v9, %v2247_v47  ;;  %v920_v32 = vsel %vm904_vm3, 1.0, %v1602_v46 }
 0x27a   : > { %v879_v31 = vsel %vm815_vm5, %v853_v38, 0.0  ;;  %v772_v52 = vpop.permute.xlu1 %771 }
 0x27b   : > { %v1414_v30 = vpop.eup %1413  ;;  %931 = vst [vmem:[#allocation2 + $0x8] sm:$0xff] %v923_v27  ;;  %vm895_vm6 = vcmp.gt.f32.partialorder %v879_v31, 0.45  ;;  %v839_v29 = vmax.f32 %v807_v11, 1e-30  ;;  %v793_v61 = vadd.f32 %v2111_v25, %v772_v52  ;;  %vm823_vm1 = vcmp.gt.f32.partialorder %v807_v11, 0.0 }
 0x27c   : > { %v911_v28 = vsel %vm895_vm6, 1.0, %v1602_v46  ;;  %v857_v13 = vmul.f32 %v1414_v30, %v2209_v22 }
 0x27d   : > { %v924_v1 = vpack.c.bf16 %v911_v28, %v910_v63  ;;  %1419 = vrcp.f32 %v839_v29  ;;  %v809_v3 = vsub.f32 %v793_v61, %v2259_v24 }
 0x27e   : > { %v881_v16 = vsel %vm817_vm8, %v857_v13, 0.0 }
 0x27f   : > { %v1416_v5 = vpop.eup %1415  ;;  %932 = vst [vmem:[#allocation2 + $0x10] sm:$0xff] %v924_v1  ;;  %vm897_vm9 = vcmp.gt.f32.partialorder %v881_v16, 0.45  ;;  %v841_v25 = vmax.f32 %v809_v3, 1e-30  ;;  %vm825_vm4 = vcmp.gt.f32.partialorder %v809_v3, 0.0 }
 0x280   : > { %v913_v2 = vsel %vm897_vm9, 1.0, %v1602_v46  ;;  %v861_v48 = vmul.f32 %v1416_v5, %v2225_v37 }
 0x281   : > { %v925_v51 = vpack.c.bf16 %v913_v2, %v912_v0  ;;  %1421 = vrcp.f32 %v841_v25 }
 0x282   : > { %v883_v22 = vsel %vm819_vm11, %v861_v48, 0.0 }
 0x283   : > { %v1418_v8 = vpop.eup %1417  ;;  %933 = vst [vmem:[#allocation2 + $0x18] sm:$0xff] %v925_v51  ;;  %vm899_vm12 = vcmp.gt.f32.partialorder %v883_v22, 0.45 }
 0x284   : > { %v915_v44 = vsel %vm899_vm12, 1.0, %v1602_v46  ;;  %v865_v45 = vmul.f32 %v1418_v8, %v2232_v56 }
 0x285   : > { %v926_v20 = vpack.c.bf16 %v915_v44, %v914_v55 }
 0x286   : > { %v885_v37 = vsel %vm821_vm14, %v865_v45, 0.0 }
 0x287   : > { %v1420_v4 = vpop.eup %1419  ;;  %934 = vst [vmem:[#allocation2 + $0x20] sm:$0xff] %v926_v20  ;;  %vm901_vm15 = vcmp.gt.f32.partialorder %v885_v37, 0.45 }
 0x288   : > { %v917_v18 = vsel %vm901_vm15, 1.0, %v1602_v46  ;;  %v869_v42 = vmul.f32 %v1420_v4, %v2247_v47 }
 0x289   : > { %v927_v14 = vpack.c.bf16 %v917_v18, %v916_v10 }
 0x28a   : > { %v887_v34 = vsel %vm823_vm1, %v869_v42, 0.0 }
 0x28b   : > { %v1422_v56 = vpop.eup %1421  ;;  %935 = vst [vmem:[#allocation2 + $0x28] sm:$0xff] %v927_v14  ;;  %vm903_vm2 = vcmp.gt.f32.partialorder %v887_v34, 0.45 }
 0x28c   : > { %v919_v12 = vsel %vm903_vm2, 1.0, %v1602_v46  ;;  %v873_v7 = vmul.f32 %v1422_v56, %v2259_v24  ;;  %v2428_v24 = vmov (%p953_p0), %v1895_v39 }
 0x28d   : > { %v928_v33 = vpack.c.bf16 %v919_v12, %v918_v6  ;;  %1146 = sbr.rel (!%p953_p0) target bundleno = 1531 (0x5fb), region = 87 }
 0x28e   : > { %v889_v47 = vsel %vm825_vm4, %v873_v7, 0.0 }
 0x28f   : > { %936 = vst [vmem:[#allocation2 + $0x30] sm:$0xff] %v928_v33  ;;  %vm905_vm5 = vcmp.gt.f32.partialorder %v889_v47, 0.45 }
 0x290   : > { %v921_v43 = vsel %vm905_vm5, 1.0, %v1602_v46 }
 0x291   : > { %v929_v36 = vpack.c.bf16 %v921_v43, %v920_v32 }
 0x293   : > { %937 = vst [vmem:[#allocation2 + $0x38] sm:$0xff] %v929_v36 }
 0x294 LB: >> { %961 = vmax.xlane.f32.xlu0 %v1589_v40  ;;  %v987_v54 = vld [vmem:[#allocation2] sm:$0xff]  ;;  %v1603_v59 = vmov 0.0   ;;  %v988_v58 = vld [vmem:[#allocation2 + $0x8] sm:$0xff]  ;;  %v989_v57 = vld [vmem:[#allocation2 + $0x10] sm:$0xff]  ;;  %vm1604_vm10 = vmmov 0   ;;  %vm1036_vm13 = vcmp.gt.f32.partialorder %v1589_v40, -inf  ;;  %v1589_v40 = vphi %v1902_v40, %v1042_v40   ;;  %v1585_v24 = vphi %v2428_v24, %v2429_v24  }
 0x295   : >> { %1220 = vmatprep.subr.bf16.mxu0 %v1603_v59  ;;  %v990_v62 = vld [vmem:[#allocation2 + $0x18] sm:$0xff]  ;;  %v991_v35 = vld [vmem:[#allocation2 + $0x20] sm:$0xff]  ;;  %v992_v50 = vld [vmem:[#allocation2 + $0x28] sm:$0xff]  ;;  %1236 = vmatprep.mubr.msk.bf16.mxu0 %vm1604_vm10, %v1603_v59  ;;  %v1605_v29 = vmov 1.0|1.0   ;;  %vm1606_vm15 = vmmov 1  }
 0x296   : >> { %1221 = vmatpush3.bf16.msra.mxu0 %v987_v54  ;;  %v993_v60 = vld [vmem:[#allocation2 + $0x30] sm:$0xff] }
 0x297   : >> { %1222 = vmatprep.subr.bf16.mxu0 %v1603_v59 }
 0x29a   : >> { %1223 = vmatpush3.bf16.msra.mxu0 %v988_v58  ;;  %v994_v38 = vld [vmem:[#allocation2 + $0x38] sm:$0xff] }
 0x29b   : >> { %1224 = vmatprep.subr.bf16.mxu0 %v1603_v59 }
 0x29e   : >> { %1225 = vmatpush3.bf16.msra.mxu0 %v989_v57 }
 0x29f   : >> { %1226 = vmatprep.subr.bf16.mxu0 %v1603_v59 }
 0x2a2   : >> { %1227 = vmatpush3.bf16.msra.mxu0 %v990_v62 }
 0x2a3   : >> { %1228 = vmatprep.subr.bf16.mxu0 %v1603_v59 }
 0x2a6   : >> { %1229 = vmatpush3.bf16.msra.mxu0 %v991_v35 }
 0x2a7   : >> { %1230 = vmatprep.subr.bf16.mxu0 %v1603_v59 }
 0x2aa   : >> { %1231 = vmatpush3.bf16.msra.mxu0 %v992_v50 }
 0x2ab   : >> { %1232 = vmatprep.subr.bf16.mxu0 %v1603_v59 }
 0x2ae   : >> { %1233 = vmatpush3.bf16.msra.mxu0 %v993_v60 }
 0x2af   : >> { %1234 = vmatprep.subr.bf16.mxu0 %v1603_v59 }
 0x2b2   : >> { %1235 = vmatpush3.bf16.msra.mxu0 %v994_v38 }
 0x321   : >> { %v962_v49 = vpop.xlane.xlu0 %961 }
 0x322   : >> { %vm963_vm6 = vcmp.gt.f32.partialorder %v962_v49, -inf  ;;  %vm964_vm7 = vcmp.eq.f32.partialorder %v1589_v40, %v962_v49 }
 0x323   : >> { %vm967_vm8 = vmand %vm964_vm7, %vm963_vm6 }
 0x324   : >> { %v968_v46 = vsel %vm967_vm8, %v1809_v19, 128 }
 0x325   : >> { %v970_v26 = vshra.s32 %v968_v46, 16  ;;  %v969_v17 = vand.u32 65535, %v968_v46 }
 0x327   : >> { %v972_v53 = vcvt.s32.f32 %v970_v26  ;;  %v971_v21 = vcvt.s32.f32 %v969_v17 }
 0x329   : >> { %973 = vmin.xlane.f32.xlu0 %v972_v53 }
 0x3b6   : >> { %v974_v9 = vpop.xlane.xlu0 %973 }
 0x3b7   : >> { %vm975_vm9 = vcmp.eq.f32.partialorder %v972_v53, %v974_v9  ;;  %v980_v27 = vcvt.f32.s32 %v974_v9 }
 0x3b8   : >> { %v976_v15 = vsel %vm975_vm9, %v971_v21, inf }
 0x3b9   : >> { %977 = vmin.xlane.f32.xlu1 %v976_v15  ;;  %v981_v31 = vshll.u32 %v980_v27, 16 }
 0x446   : >> { %v978_v11 = vpop.xlane.xlu1 %977 }
 0x447   : >> { %v979_v52 = vcvt.f32.s32 %v978_v11 }
 0x449   : >> { %v982_v30 = vadd.s32 %v981_v31, %v979_v52 }
 0x44b   : >> { %vm983_vm11 = vcmp.eq.s32.totalorder %v1809_v19, %v982_v30 }
 0x44c   : >> { %vm1205_vm12 = vmpackc.low %vm983_vm11, %vm983_vm11 }
 0x44d   : >> { %1237 = vmatmul.mubr.msk.bf16.vlgmr.msra.gmra.mrb[0].mxu0 %vm1205_vm12, %v1605_v29  ;;  %vm1037_vm0 = vmxor %vm983_vm11, %vm1606_vm15 }
 0x520   : >> { %v1029_v61 = vpop.f32.mrb[0].mxu0 }
 0x521   : >> { %vm1035_vm14 = vcmp.gt.f32.partialorder %v1029_v61, 0.5  ;;  %v1238_v63 = vpop.f32.mrb[1].mxu0 }
 0x522   : >> { %vm1038_vm1 = vmand %vm1035_vm14, %vm1037_vm0  ;;  %v1032_v28 = vpop.f32.mrb[2].mxu0 }
 0x523   : >> { %vm1039_vm2 = vmand %vm1038_vm1, %vm1036_vm13  ;;  %v1239_v13 = vpop.f32.mrb[3].mxu0 }
 0x524   : >> { %v1040_v1 = vsel %vm1039_vm2, 0.0, %v1585_v24   ;;  %vm1041_vm3 = vmor %vm983_vm11, %vm1035_vm14 }
 0x525   : >> { %v1042_v40 = vsel %vm1041_vm3, -inf, %v1589_v40   ;;  %v2429_v24 = vmov %v1040_v1 }
 0x526   : >> { %1043 = vmax.xlane.f32.xlu1 %v1042_v40 }
 0x5b3   : >> { %v1044_v3 = vpop.xlane.xlu1 %1043 }
 0x5b4   : >> { %v1045_v16 = vrot.slane %v1044_v3, 4 }
 0x5b6   : >> { %v1046_v5 = vmax.f32 %v1044_v3, %v1045_v16 }
 0x5b8   : >> { %v1047_v25 = vrot.slane %v1046_v5, 2 }
 0x5ba   : >> { %v1048_v0 = vmax.f32 %v1046_v5, %v1047_v25 }
 0x5bc   : >> { %v1049_v2 = vrot.slane %v1048_v0, 1 }
 0x5be   : >> { %v1050_v48 = vmax.f32 %v1048_v0, %v1049_v2 }
 0x5c0   : >> { %1242 = vpush %v1050_v48 }
 0x5f1   : >> { %s1243_s19 = spop %1242 }
 0x5f2   : >> { %p1052_p5 = scmp.gt.f32.partialorder %s1243_s19, -inf }
 0x5f3   : > { %v2430_v23 = vmov (!%p1052_p5), %v1040_v1 }
 0x5f4   : > { %960 = sbr.rel (%p1052_p5) target bundleno = 660 (0x294), region = 93 }
 0x5fb PF: > { %vm1059_vm4 = vcmp.lt.s32.totalorder %v1917_v41, 4  ;;  %s1208_s30 = sshll.u32 %s1573_s12, 6  ;;  %s1080_s29 = sshll.u32 %s212_s16, 4  ;;  %v1593_v23 = vphi %v2427_v23, %v2430_v23   ;;  %s1081_s29 = int_to_ptr.vmem [resolvable:$true] %s1080_s29 }
 0x5fc   : > { %v1063_v51 = vsel %vm1059_vm4, %v1593_v23, %v1895_v39  ;;  %s2361_s28 = scalar_lea.hbm %s2410_s2, %s1208_s30  ;;  %s1066_s25 = scalar_lea.sflag [#allocation5], %s1777_s15 }
 0x5fd   : > { %1064 = vst [vmem:[%s212_s16] sm:$0xf] %v1063_v51  ;;  %s1483_s26 = scalar_lea.vmem %s1081_s29, 64  ;;  %p2431_p4 = scmp.ne.s32.totalorder %s2415_s22, 0 }
 0x5fe   : > { %p1484_p7 = scmp.ne.s32.totalorder %s1081_s29, %s1483_s26  ;;  %s1607_s3 = smov [#allocation8]  }
 0x5ff   : > { %s1487_s12 = sshll.u32 %s1607_s3, 4  ;;  %s1488_s12 = int_to_ptr.vmem [resolvable:$false] %s1487_s12 }
 0x600   : > { %p1485_p10 = pnand %p1484_p7, %p2431_p4  ;;  %s1489_s8 = scalar_lea.vmem %s1488_s12, 128 }
 0x601   : > { %p1490_p1 = scmp.lt.s32.totalorder %s1081_s29, %s1488_s12  ;;  %p1491_p2 = scmp.lt.s32.totalorder %s1489_s8, %s1483_s26 }
 0x602   : > { %p1486_p12 = pneg %p1485_p10 }
 0x603   : > { %p1492_p9 = por %p1491_p2, %p1490_p1 }
 0x605   : > { %p1493_p11 = pnand %p1492_p9, %p1486_p12 }
 0x607   : > { %1496 = shalt.err (!%p1493_p11)
}
 0x608   : > { %s1497_s15 = scalar_lea.hbm %s2361_s28, 64  ;;  %s1501_s6 = scalar_lea.hbm %s2410_s2, 128 }
 0x609   : > { %p1498_p3 = scmp.ne.s32.totalorder %s2361_s28, %s1497_s15  ;;  %p1502_p8 = scmp.lt.u32.totalorder %s2361_s28, %s2410_s2 }
 0x60a   : > { %p1503_p0 = scmp.lt.u32.totalorder %s1501_s6, %s1497_s15  ;;  %p1505_p7 = scmp.lt.u32.totalorder %s1497_s15, %s2361_s28 }
 0x60b   : > { %p1499_p6 = pnand %p1498_p3, %p2431_p4 }
 0x60c   : > { %p1504_p5 = por %p1503_p0, %p1502_p8 }
 0x60d   : > { %p1500_p13 = pneg %p1499_p6 }
 0x60e   : > { %p1506_p10 = por %p1505_p7, %p1504_p5 }
 0x610   : > { %p1507_p12 = pnand %p1506_p10, %p1500_p13 }
 0x612   : > { %1510 = shalt.err (!%p1507_p12)
}
 0x613   : > { %1248 = dma.vmem_to_hbm [thread:$0]  (%p2431_p4), %s1081_s29, 64, %s2361_s28, %s1066_s25  }
 0x614 PF: > { %s1092_s21 = sand.u32 1, %s1561_s9   ;;  %p2432_p1 = scmp.ne.s32.totalorder %s2416_s24, 0 }
 0x615   : > { %p2433_p2 = scmp.ge.s32.totalorder %s1581_s14, 2  ;;  %s1093_s16 = scalar_lea.sflag [#allocation5], %s1092_s21 }
 0x617   : > { %p1258_p9 = pnand %p2433_p2, %p2432_p1 }
 0x619   : > { %1556 = dma.done.wait (!%p1258_p9), %s1093_s16, 64  }
 0x61a   : > { %1558 = vsyncadd (!%p1258_p9), %s1093_s16, 4294967232  ;;  %s21_s14 = sadd.s32 1, %s1581_s14   ;;  %s2434_s9 = smov %s1565_s10 }
 0x61b   : > { %p18_p11 = scmp.ge.s32.totalorder %s21_s14, 4   ;;  %s2435_s10 = smov %s1569_s11 }
 0x61c   : > { %s2436_s11 = smov %s1679_s23  ;;  %s2437_s12 = smov %s1577_s13 }
 0x61d   : > { %s2438_s13 = smov %s2440_s17  ;;  %20 = sbr.rel (!%p18_p11) target bundleno = 8 (0x8), region = 104 }
 0x624   :  { %1098 = vsyncpa [#allocation4], 1 }
 0x625   :  { %1100 = vsyncpa [#allocation4 + $0x1], 1 }
 0x626   :  { %1101 = vsyncpa [#allocation7], 1 }
 0x627   :  { %1103 = vsyncpa [#allocation7 + $0x1], 1 }
 0x628   :  { %1104 = vsyncpa [#allocation5], 1 }
 0x629   :  { %1106 = vsyncpa [#allocation5 + $0x1], 1 }

</bundles_post_ra>
